<compile_context>
chip_gen: v7x
topology: tpu7x:2x2x1
jax: 0.10.0
libtpu: 0.0.40
codegen_flags: <defaults>
</compile_context>

<pallas_src>
import functools

import jax
import jax.numpy as jnp
from jax.experimental import pallas as pl
from jax.experimental.pallas import tpu as pltpu

# ---- synthetic, scaled-down dims (PyTorch defaults: image_feature_dim=2048,
# ---- word_feature_dim=512, intermediary_dim=256, 80 classes / 60 train) ----
BATCH = 2
CHANS = 4
HW = 16
PATCH = 4
P = (HW // PATCH) * (HW // PATCH)      # 16 spatial locations
CP = CHANS * PATCH * PATCH             # 64 patch feature dim
IMG_DIM = 128                          # image_feature_dim
WORD_DIM = 128                         # word_feature_dim (== IMG_DIM so sd @ text.T is well-defined)
INTER_DIM = 128                        # intermediary_dim
NUM_CLASSES = 8                        # stands in for 80
NUM_TRAIN = 6                          # stands in for 60
OUT_LANES = 128                        # lane-dense padded output width


def _clip_sd_kernel(ncls,
                    patches_ref, w_embed_ref, b_embed_ref, text_ref,
                    w1_ref, w2_ref, v_att_ref, b_att_ref, scale_ref, out_ref):
    f32 = jnp.float32
    bf16 = jnp.bfloat16

    # ---- stand-in for clip_model.encode_image: patch-embedding matmul ----
    # TODO(synk): the full CLIP visual backbone (ResNet/ViT) is not reproduced;
    # a single patch-embedding projection is used as the image encoder.
    x = patches_ref[...].astype(bf16)                                   # (B*P, CP)
    img_feat = jnp.dot(x, w_embed_ref[...].astype(bf16),
                       preferred_element_type=f32) + b_embed_ref[...]   # (B*P, IMG)

    # ---- semantic decoupling (word_semantic), class loop fully vectorized ----
    f_wh = jnp.dot(img_feat.astype(bf16), w1_ref[...].astype(bf16),
                   preferred_element_type=f32)                          # (B*P, INTER)
    text = text_ref[...]                                                # (ncls, WORD)
    f_wd = jnp.dot(text.astype(bf16), w2_ref[...].astype(bf16),
                   preferred_element_type=f32)                          # (ncls, INTER)

    v_att = v_att_ref[...][None]          # (1, 1, INTER): folded w3 @ wa
    b_att = b_att_ref[0, 0]               # folded b3·wa + ba (SMEM scalar)
    scale = scale_ref[0, 0]               # exp(logit_scale)  (SMEM scalar)

    # loop-invariant work hoisted out of the per-batch loop
    text_n = text * jax.lax.rsqrt(jnp.sum(text * text, axis=-1, keepdims=True))
    eye_pad = (jax.lax.broadcasted_iota(jnp.int32, (ncls, OUT_LANES), 0) ==
               jax.lax.broadcasted_iota(jnp.int32, (ncls, OUT_LANES), 1))

    rows = []
    for b in range(BATCH):                                              # static, tiny
        f_wh_b = f_wh[b * P:(b + 1) * P, :]                             # (P, INTER)
        img_b = img_feat[b * P:(b + 1) * P, :]                          # (P, IMG)

        lb = jnp.tanh(f_wd[:, None, :] * f_wh_b[None, :, :])            # (ncls, P, INTER)
        att = jnp.sum(lb * v_att, axis=-1) + b_att                      # (ncls, P)
        # softmax over the spatial axis P (lane axis); approx-reciprocal scale
        # error cancels after the L2 normalisation below.
        att = jnp.exp(att - jnp.max(att, axis=-1, keepdims=True))
        att = att * pl.reciprocal(jnp.sum(att, axis=-1, keepdims=True), approx=True)

        sd = jnp.dot(att.astype(bf16), img_b.astype(bf16),
                     preferred_element_type=f32)                        # (ncls, IMG)
        sd = jnp.maximum(sd, 0.0)                                       # relu
        # NOTE: matches PyTorch (no epsilon); an all-zero row after relu would
        # give inf/nan in both kernel and reference.
        sd = sd * jax.lax.rsqrt(jnp.sum(sd * sd, axis=-1, keepdims=True))

        # diagonal(sd_n @ text_n.T): per-class cosine, spread onto lanes so the
        # final store is a full-width (lane-dense) vst.
        diag = jnp.sum(sd * text_n, axis=-1, keepdims=True)             # (ncls, 1)
        rows.append(jnp.sum(jnp.where(eye_pad, diag, 0.0),
                            axis=0, keepdims=True))                     # (1, OUT_LANES)

    out_ref[...] = scale * jnp.concatenate(rows, axis=0)                # (BATCH, OUT_LANES)


def _extract_patches(image):
    B, C, H, W = image.shape
    x = image.reshape(B, C, H // PATCH, PATCH, W // PATCH, PATCH)
    x = x.transpose(0, 2, 4, 1, 3, 5)
    return x.reshape(B, P, CP).astype(jnp.float32)


def clip_sd_forward(image, params, train=True):
    ncls = NUM_TRAIN if train else NUM_CLASSES
    text = params["text_features"][:ncls]
    patches = _extract_patches(image).reshape(BATCH * P, CP)
    scale_exp = jnp.exp(params["logit_scale"])                          # logit_scale.exp()

    # Algebraic fold of fc_3 + fc_attention (exact in infinite precision):
    #   att = (lb @ w3 + b3) · wa + ba  ==  lb @ (w3 @ wa) + (b3·wa + ba)
    v_att = jnp.dot(params["w3"], params["wa"][0],
                    precision=jax.lax.Precision.HIGHEST)[None, :]       # (1, INTER)
    b_att = (jnp.sum(params["b3"] * params["wa"])
             + params["ba"][0, 0]).reshape(1, 1)

    vmem = pl.BlockSpec(memory_space=pltpu.MemorySpace.VMEM)
    smem = pl.BlockSpec(memory_space=pltpu.MemorySpace.SMEM)

    out = pl.pallas_call(
        functools.partial(_clip_sd_kernel, ncls),
        out_shape=jax.ShapeDtypeStruct((BATCH, OUT_LANES), jnp.float32),
        in_specs=[vmem, vmem, vmem, vmem, vmem, vmem, vmem, smem, smem],
        out_specs=vmem,
    )(patches, params["w_embed"], params["b_embed"], text,
      params["w1"], params["w2"], v_att, b_att, scale_exp)
    return out[:, :ncls]


def init_params(key):
    ks = jax.random.split(key, 7)

    def lin(k, fan_in, fan_out):
        return jax.random.normal(k, (fan_in, fan_out), jnp.float32) / jnp.sqrt(fan_in)

    return dict(
        w_embed=lin(ks[0], CP, IMG_DIM),
        b_embed=jnp.zeros((1, IMG_DIM), jnp.float32),
        # TODO(synk): stands in for clip_model.encode_text(tokenized prompts)
        text_features=jax.random.normal(ks[1], (NUM_CLASSES, WORD_DIM), jnp.float32),
        w1=lin(ks[2], IMG_DIM, INTER_DIM),
        w2=lin(ks[3], WORD_DIM, INTER_DIM),
        w3=lin(ks[4], INTER_DIM, INTER_DIM),
        b3=0.01 * jax.random.normal(ks[5], (1, INTER_DIM), jnp.float32),
        wa=lin(ks[6], INTER_DIM, 1).T,                                  # (1, INTER_DIM)
        ba=jnp.zeros((1, 1), jnp.float32),
        logit_scale=jnp.full((1, 1), jnp.log(1.0 / 0.07), jnp.float32),
    )


def reference_forward(image, params, train=True):
    """Pure-JAX reference mirroring the PyTorch forward semantics.

    The heavy matmuls cast operands to bf16 with f32 accumulation so that the
    oracle uses the same single-pass MXU numerics as the kernel; the folded
    attention projection is compared against the unfolded fc_3/fc_attention
    path computed at HIGHEST precision.
    """
    f32 = jnp.float32
    bf16 = jnp.bfloat16
    hi = jax.lax.Precision.HIGHEST
    ncls = NUM_TRAIN if train else NUM_CLASSES
    text = params["text_features"][:ncls]
    patches = _extract_patches(image)                                   # (B,P,CP)

    def mm(a, b):
        return jnp.matmul(a.astype(bf16), b.astype(bf16), preferred_element_type=f32)

    img_feat = mm(patches, params["w_embed"]) + params["b_embed"]       # (B,P,D)
    f_wh = mm(img_feat, params["w1"])                                   # (B,P,I)
    f_wd = mm(text, params["w2"])                                       # (ncls,I)
    lb = jnp.tanh(f_wh[:, :, None, :] * f_wd[None, None, :, :])         # (B,P,C,I)
    lb2 = jnp.einsum("bpci,ij->bpcj", lb, params["w3"], precision=hi) + params["b3"]
    att = jnp.sum(lb2 * params["wa"][0], axis=-1) + params["ba"][0, 0]  # (B,P,C)
    att = jax.nn.softmax(att, axis=1)
    sd = jnp.einsum("bpc,bpd->bcd", att.astype(bf16), img_feat.astype(bf16),
                    preferred_element_type=f32)                         # (B,C,D)
    sd = jax.nn.relu(sd)
    sd = sd / jnp.linalg.norm(sd, axis=-1, keepdims=True)
    tn = text / jnp.linalg.norm(text, axis=-1, keepdims=True)
    logits = jnp.exp(params["logit_scale"][0, 0]) * jnp.einsum(
        "bcd,kd->bck", sd, tn, precision=hi)
    return jnp.diagonal(logits, axis1=-2, axis2=-1)                     # (B, ncls)


if __name__ == "__main__":
    key = jax.random.PRNGKey(0)
    pkey, ikey = jax.random.split(key)
    params = init_params(pkey)
    image = jax.random.normal(ikey, (BATCH, CHANS, HW, HW), jnp.float32)

    out = clip_sd_forward(image, params, train=True)
    out = jax.block_until_ready(out)

    ref = reference_forward(image, params, train=True)
    assert out.shape == (BATCH, NUM_TRAIN), out.shape
    if not jnp.allclose(out, ref, rtol=2e-2, atol=2e-2):
        raise AssertionError(
            f"mismatch: max abs err {float(jnp.max(jnp.abs(out - ref)))}")
    print("KERNEL_OK")
</pallas_src>

<mosaic_0001>
module attributes {stable_mosaic.version = 11 : i64} {
  func.func @_clip_sd_kernel(%arg0: memref<32x64xf32, #tpu.memory_space<vmem>>, %arg1: memref<64x128xf32, #tpu.memory_space<vmem>>, %arg2: memref<1x128xf32, #tpu.memory_space<vmem>>, %arg3: memref<6x128xf32, #tpu.memory_space<vmem>>, %arg4: memref<128x128xf32, #tpu.memory_space<vmem>>, %arg5: memref<128x128xf32, #tpu.memory_space<vmem>>, %arg6: memref<1x128xf32, #tpu.memory_space<vmem>>, %arg7: memref<1x1xf32, #tpu.memory_space<smem>>, %arg8: memref<1x1xf32, #tpu.memory_space<smem>>, %arg9: memref<2x128xf32, #tpu.memory_space<vmem>>) attributes {dimension_semantics = [], scalar_prefetch = 0 : i64, scratch_operands = 0 : i64, tpu.core_type = #tpu.core_type<tc>} {
    %c0 = arith.constant 0 : index
    %c0_0 = arith.constant 0 : index
    %0 = vector.load %arg0[%c0, %c0_0] : memref<32x64xf32, #tpu.memory_space<vmem>>, vector<32x64xf32>
    %1 = arith.truncf %0 : vector<32x64xf32> to vector<32x64xbf16>
    %c0_1 = arith.constant 0 : index
    %c0_2 = arith.constant 0 : index
    %2 = vector.load %arg1[%c0_1, %c0_2] : memref<64x128xf32, #tpu.memory_space<vmem>>, vector<64x128xf32>
    %3 = arith.truncf %2 : vector<64x128xf32> to vector<64x128xbf16>
    %cst = arith.constant dense<0.000000e+00> : vector<32x128xf32>
    %4 = tpu.matmul %1, %3, %cst {dimension_numbers = #tpu.dot_dimension_numbers<[1], [0], [0], [1], [0, 0, 1, 1], [], []>} : vector<32x64xbf16>, vector<64x128xbf16>, vector<32x128xf32> -> vector<32x128xf32>
    %c0_3 = arith.constant 0 : index
    %c0_4 = arith.constant 0 : index
    %5 = vector.load %arg2[%c0_3, %c0_4] : memref<1x128xf32, #tpu.memory_space<vmem>>, vector<1x128xf32>
    %6 = vector.broadcast %5 : vector<1x128xf32> to vector<32x128xf32>
    %7 = arith.addf %4, %6 : vector<32x128xf32>
    %8 = arith.truncf %7 : vector<32x128xf32> to vector<32x128xbf16>
    %c0_5 = arith.constant 0 : index
    %c0_6 = arith.constant 0 : index
    %9 = vector.load %arg4[%c0_5, %c0_6] : memref<128x128xf32, #tpu.memory_space<vmem>>, vector<128x128xf32>
    %10 = arith.truncf %9 : vector<128x128xf32> to vector<128x128xbf16>
    %cst_7 = arith.constant dense<0.000000e+00> : vector<32x128xf32>
    %11 = tpu.matmul %8, %10, %cst_7 {dimension_numbers = #tpu.dot_dimension_numbers<[1], [0], [0], [1], [0, 0, 1, 1], [], []>} : vector<32x128xbf16>, vector<128x128xbf16>, vector<32x128xf32> -> vector<32x128xf32>
    %c0_8 = arith.constant 0 : index
    %c0_9 = arith.constant 0 : index
    %12 = vector.load %arg3[%c0_8, %c0_9] : memref<6x128xf32, #tpu.memory_space<vmem>>, vector<6x128xf32>
    %13 = arith.truncf %12 : vector<6x128xf32> to vector<6x128xbf16>
    %c0_10 = arith.constant 0 : index
    %c0_11 = arith.constant 0 : index
    %14 = vector.load %arg5[%c0_10, %c0_11] : memref<128x128xf32, #tpu.memory_space<vmem>>, vector<128x128xf32>
    %15 = arith.truncf %14 : vector<128x128xf32> to vector<128x128xbf16>
    %cst_12 = arith.constant dense<0.000000e+00> : vector<6x128xf32>
    %16 = tpu.matmul %13, %15, %cst_12 {dimension_numbers = #tpu.dot_dimension_numbers<[1], [0], [0], [1], [0, 0, 1, 1], [], []>} : vector<6x128xbf16>, vector<128x128xbf16>, vector<6x128xf32> -> vector<6x128xf32>
    %c0_13 = arith.constant 0 : index
    %c0_14 = arith.constant 0 : index
    %17 = vector.load %arg6[%c0_13, %c0_14] : memref<1x128xf32, #tpu.memory_space<vmem>>, vector<1x128xf32>
    %18 = vector.shape_cast %17 : vector<1x128xf32> to vector<1x1x128xf32>
    %c0_15 = arith.constant 0 : index
    %c0_16 = arith.constant 0 : index
    %19 = memref.load %arg7[%c0_15, %c0_16] : memref<1x1xf32, #tpu.memory_space<smem>>
    %c0_17 = arith.constant 0 : index
    %c0_18 = arith.constant 0 : index
    %20 = memref.load %arg8[%c0_17, %c0_18] : memref<1x1xf32, #tpu.memory_space<smem>>
    %21 = arith.mulf %12, %12 : vector<6x128xf32>
    %cst_19 = arith.constant dense<0.000000e+00> : vector<6xf32>
    %22 = vector.multi_reduction <add>, %21, %cst_19 [1] : vector<6x128xf32> to vector<6xf32>
    %23 = vector.shape_cast %22 : vector<6xf32> to vector<6x1xf32>
    %24 = math.rsqrt %23 : vector<6x1xf32>
    %25 = vector.broadcast %24 : vector<6x1xf32> to vector<6x128xf32>
    %26 = arith.mulf %12, %25 : vector<6x128xf32>
    %27 = tpu.iota {dimensions = array<i32: 0>} : vector<6x128xi32>
    %28 = tpu.iota {dimensions = array<i32: 1>} : vector<6x128xi32>
    %29 = arith.cmpi eq, %27, %28 : vector<6x128xi32>
    %30 = vector.extract_strided_slice %11 {offsets = [0, 0], sizes = [16, 128], strides = [1, 1]} : vector<32x128xf32> to vector<16x128xf32>
    %31 = vector.extract_strided_slice %7 {offsets = [0, 0], sizes = [16, 128], strides = [1, 1]} : vector<32x128xf32> to vector<16x128xf32>
    %32 = vector.shape_cast %16 : vector<6x128xf32> to vector<6x1x128xf32>
    %33 = vector.shape_cast %30 : vector<16x128xf32> to vector<1x16x128xf32>
    %34 = vector.broadcast %32 : vector<6x1x128xf32> to vector<6x16x128xf32>
    %35 = vector.broadcast %33 : vector<1x16x128xf32> to vector<6x16x128xf32>
    %36 = arith.mulf %34, %35 : vector<6x16x128xf32>
    %37 = math.tanh %36 : vector<6x16x128xf32>
    %38 = vector.broadcast %18 : vector<1x1x128xf32> to vector<6x16x128xf32>
    %39 = arith.mulf %37, %38 : vector<6x16x128xf32>
    %cst_20 = arith.constant dense<0.000000e+00> : vector<6x16xf32>
    %40 = vector.multi_reduction <add>, %39, %cst_20 [2] : vector<6x16x128xf32> to vector<6x16xf32>
    %41 = vector.broadcast %19 : f32 to vector<6x16xf32>
    %42 = arith.addf %40, %41 : vector<6x16xf32>
    %cst_21 = arith.constant dense<0xFF800000> : vector<6xf32>
    %43 = vector.multi_reduction <maximumf>, %42, %cst_21 [1] : vector<6x16xf32> to vector<6xf32>
    %44 = vector.shape_cast %43 : vector<6xf32> to vector<6x1xf32>
    %45 = vector.broadcast %44 : vector<6x1xf32> to vector<6x16xf32>
    %46 = arith.subf %42, %45 : vector<6x16xf32>
    %47 = math.exp %46 : vector<6x16xf32>
    %cst_22 = arith.constant dense<0.000000e+00> : vector<6xf32>
    %48 = vector.multi_reduction <add>, %47, %cst_22 [1] : vector<6x16xf32> to vector<6xf32>
    %49 = vector.shape_cast %48 : vector<6xf32> to vector<6x1xf32>
    %50 = tpu.reciprocal %49 {approx = true} : vector<6x1xf32> -> vector<6x1xf32>
    %51 = vector.broadcast %50 : vector<6x1xf32> to vector<6x16xf32>
    %52 = arith.mulf %47, %51 : vector<6x16xf32>
    %53 = arith.truncf %52 : vector<6x16xf32> to vector<6x16xbf16>
    %54 = arith.truncf %31 : vector<16x128xf32> to vector<16x128xbf16>
    %cst_23 = arith.constant dense<0.000000e+00> : vector<6x128xf32>
    %55 = tpu.matmul %53, %54, %cst_23 {dimension_numbers = #tpu.dot_dimension_numbers<[1], [0], [0], [1], [0, 0, 1, 1], [], []>} : vector<6x16xbf16>, vector<16x128xbf16>, vector<6x128xf32> -> vector<6x128xf32>
    %cst_24 = arith.constant 0.000000e+00 : f32
    %56 = vector.broadcast %cst_24 : f32 to vector<6x128xf32>
    %57 = arith.maximumf %55, %56 : vector<6x128xf32>
    %58 = arith.mulf %57, %57 : vector<6x128xf32>
    %cst_25 = arith.constant dense<0.000000e+00> : vector<6xf32>
    %59 = vector.multi_reduction <add>, %58, %cst_25 [1] : vector<6x128xf32> to vector<6xf32>
    %60 = vector.shape_cast %59 : vector<6xf32> to vector<6x1xf32>
    %61 = math.rsqrt %60 : vector<6x1xf32>
    %62 = vector.broadcast %61 : vector<6x1xf32> to vector<6x128xf32>
    %63 = arith.mulf %57, %62 : vector<6x128xf32>
    %64 = arith.mulf %63, %26 : vector<6x128xf32>
    %cst_26 = arith.constant dense<0.000000e+00> : vector<6xf32>
    %65 = vector.multi_reduction <add>, %64, %cst_26 [1] : vector<6x128xf32> to vector<6xf32>
    %66 = vector.shape_cast %65 : vector<6xf32> to vector<6x1xf32>
    %cst_27 = arith.constant 0.000000e+00 : f32
    %67 = vector.shape_cast %66 : vector<6x1xf32> to vector<6x1xf32>
    %68 = vector.broadcast %67 : vector<6x1xf32> to vector<6x128xf32>
    %69 = vector.broadcast %cst_27 : f32 to vector<6x128xf32>
    %70 = arith.select %29, %68, %69 : vector<6x128xi1>, vector<6x128xf32>
    %cst_28 = arith.constant dense<0.000000e+00> : vector<128xf32>
    %71 = vector.multi_reduction <add>, %70, %cst_28 [0] : vector<6x128xf32> to vector<128xf32>
    %72 = vector.shape_cast %71 : vector<128xf32> to vector<1x128xf32>
    %73 = vector.extract_strided_slice %11 {offsets = [16, 0], sizes = [16, 128], strides = [1, 1]} : vector<32x128xf32> to vector<16x128xf32>
    %74 = vector.extract_strided_slice %7 {offsets = [16, 0], sizes = [16, 128], strides = [1, 1]} : vector<32x128xf32> to vector<16x128xf32>
    %75 = vector.shape_cast %16 : vector<6x128xf32> to vector<6x1x128xf32>
    %76 = vector.shape_cast %73 : vector<16x128xf32> to vector<1x16x128xf32>
    %77 = vector.broadcast %75 : vector<6x1x128xf32> to vector<6x16x128xf32>
    %78 = vector.broadcast %76 : vector<1x16x128xf32> to vector<6x16x128xf32>
    %79 = arith.mulf %77, %78 : vector<6x16x128xf32>
    %80 = math.tanh %79 : vector<6x16x128xf32>
    %81 = vector.broadcast %18 : vector<1x1x128xf32> to vector<6x16x128xf32>
    %82 = arith.mulf %80, %81 : vector<6x16x128xf32>
    %cst_29 = arith.constant dense<0.000000e+00> : vector<6x16xf32>
    %83 = vector.multi_reduction <add>, %82, %cst_29 [2] : vector<6x16x128xf32> to vector<6x16xf32>
    %84 = vector.broadcast %19 : f32 to vector<6x16xf32>
    %85 = arith.addf %83, %84 : vector<6x16xf32>
    %cst_30 = arith.constant dense<0xFF800000> : vector<6xf32>
    %86 = vector.multi_reduction <maximumf>, %85, %cst_30 [1] : vector<6x16xf32> to vector<6xf32>
    %87 = vector.shape_cast %86 : vector<6xf32> to vector<6x1xf32>
    %88 = vector.broadcast %87 : vector<6x1xf32> to vector<6x16xf32>
    %89 = arith.subf %85, %88 : vector<6x16xf32>
    %90 = math.exp %89 : vector<6x16xf32>
    %cst_31 = arith.constant dense<0.000000e+00> : vector<6xf32>
    %91 = vector.multi_reduction <add>, %90, %cst_31 [1] : vector<6x16xf32> to vector<6xf32>
    %92 = vector.shape_cast %91 : vector<6xf32> to vector<6x1xf32>
    %93 = tpu.reciprocal %92 {approx = true} : vector<6x1xf32> -> vector<6x1xf32>
    %94 = vector.broadcast %93 : vector<6x1xf32> to vector<6x16xf32>
    %95 = arith.mulf %90, %94 : vector<6x16xf32>
    %96 = arith.truncf %95 : vector<6x16xf32> to vector<6x16xbf16>
    %97 = arith.truncf %74 : vector<16x128xf32> to vector<16x128xbf16>
    %cst_32 = arith.constant dense<0.000000e+00> : vector<6x128xf32>
    %98 = tpu.matmul %96, %97, %cst_32 {dimension_numbers = #tpu.dot_dimension_numbers<[1], [0], [0], [1], [0, 0, 1, 1], [], []>} : vector<6x16xbf16>, vector<16x128xbf16>, vector<6x128xf32> -> vector<6x128xf32>
    %cst_33 = arith.constant 0.000000e+00 : f32
    %99 = vector.broadcast %cst_33 : f32 to vector<6x128xf32>
    %100 = arith.maximumf %98, %99 : vector<6x128xf32>
    %101 = arith.mulf %100, %100 : vector<6x128xf32>
    %cst_34 = arith.constant dense<0.000000e+00> : vector<6xf32>
    %102 = vector.multi_reduction <add>, %101, %cst_34 [1] : vector<6x128xf32> to vector<6xf32>
    %103 = vector.shape_cast %102 : vector<6xf32> to vector<6x1xf32>
    %104 = math.rsqrt %103 : vector<6x1xf32>
    %105 = vector.broadcast %104 : vector<6x1xf32> to vector<6x128xf32>
    %106 = arith.mulf %100, %105 : vector<6x128xf32>
    %107 = arith.mulf %106, %26 : vector<6x128xf32>
    %cst_35 = arith.constant dense<0.000000e+00> : vector<6xf32>
    %108 = vector.multi_reduction <add>, %107, %cst_35 [1] : vector<6x128xf32> to vector<6xf32>
    %109 = vector.shape_cast %108 : vector<6xf32> to vector<6x1xf32>
    %cst_36 = arith.constant 0.000000e+00 : f32
    %110 = vector.shape_cast %109 : vector<6x1xf32> to vector<6x1xf32>
    %111 = vector.broadcast %110 : vector<6x1xf32> to vector<6x128xf32>
    %112 = vector.broadcast %cst_36 : f32 to vector<6x128xf32>
    %113 = arith.select %29, %111, %112 : vector<6x128xi1>, vector<6x128xf32>
    %cst_37 = arith.constant dense<0.000000e+00> : vector<128xf32>
    %114 = vector.multi_reduction <add>, %113, %cst_37 [0] : vector<6x128xf32> to vector<128xf32>
    %115 = vector.shape_cast %114 : vector<128xf32> to vector<1x128xf32>
    %116 = tpu.concatenate %72, %115 in 0 : vector<1x128xf32>, vector<1x128xf32> -> vector<2x128xf32>
    %117 = vector.broadcast %20 : f32 to vector<2x128xf32>
    %118 = arith.mulf %117, %116 : vector<2x128xf32>
    %c0_38 = arith.constant 0 : index
    %c0_39 = arith.constant 0 : index
    %119 = vector.load %arg9[%c0_38, %c0_39] : memref<2x128xf32, #tpu.memory_space<vmem>>, vector<2x128xf32>
    tpu.vector_store %arg9[%c0_38, %c0_39], %118 {strides = array<i32>} : memref<2x128xf32, #tpu.memory_space<vmem>>, vector<2x128xf32>,
    return
  }
}

</mosaic_0001>

<bundles_post_ra>
// kernel: tpu_custom_call.1
= control target key start
LH: loop header
LB: loop body
LE: loop exit
PB: predicated region body
PF: predicated region fallthrough
CT: control target
= control target key end

     0   :  { %16 = vsyncpa [#allocation5], 0  ;;  %s2573_s0 = inlined_call_operand.hbm [shape: f32[32,64], index: 0, kind: input, shape index: {}]   ;;  %s2574_s1 = inlined_call_operand.hbm [shape: f32[64,128], index: 1, kind: input, shape index: {}]   ;;  %s2575_s2 = inlined_call_operand.vmem [shape: f32[1,128], index: 2, kind: input, shape index: {}]   ;;  %s2576_s3 = inlined_call_operand.vmem [shape: f32[6,128], index: 3, kind: input, shape index: {}]   ;;  %s2577_s4 = inlined_call_operand.hbm [shape: f32[128,128], index: 4, kind: input, shape index: {}]   ;;  %s2578_s5 = inlined_call_operand.hbm [shape: f32[128,128], index: 5, kind: input, shape index: {}]   ;;  %s2579_s6 = inlined_call_operand.vmem [shape: f32[1,128], index: 6, kind: input, shape index: {}]   ;;  %s2580_s7 = inlined_call_operand.<no memory space> [shape: f32[1,1], index: 7, kind: input, shape index: {}]   ;;  %s2581_s8 = inlined_call_operand.<no memory space> [shape: f32[1,1], index: 8, kind: input, shape index: {}]   ;;  %s2582_s9 = inlined_call_operand.hbm [shape: f32[2,128], index: 9, kind: output, shape index: {}]  }
   0x1   :  { %17 = vsyncpa [#allocation8], 0 }
   0x2   :  { %18 = vsyncpa [#allocation11], 0 }
   0x3   :  { %19 = vsyncpa [#allocation6], 0  ;;  %s1883_s30 = smov [#allocation7]   ;;  %s1884_s11 = smov [#allocation4]  }
   0x4   :  { %s37_s10 = sshll.u32 %s1883_s30, 4  ;;  %s25_s12 = sshll.u32 %s1884_s11, 4  ;;  %s38_s10 = int_to_ptr.vmem [resolvable:$true] %s37_s10  ;;  %s1944_s12 = int_to_ptr.vmem [resolvable:$true] %s25_s12 }
   0x5   :  { %s1765_s15 = scalar_lea.hbm %s2574_s1, 1024 }
   0x6   :  { %p1766_p0 = scmp.ne.s32.totalorder %s2574_s1, %s1765_s15  ;;  %p1769_p1 = scmp.lt.u32.totalorder %s1765_s15, %s2574_s1 }
   0x8   :  { %p1771_p2 = pnand %p1769_p1, %p1766_p0 }
   0xa   :  { %1774 = shalt.err (!%p1771_p2)
}
   0xb   :  { %s1775_s20 = scalar_lea.vmem %s38_s10, 1024  ;;  %p1780_p4 = scmp.lt.s32.totalorder %s38_s10, %s38_s10 }
   0xc   :  { %p1776_p3 = scmp.ne.s32.totalorder %s38_s10, %s1775_s20  ;;  %p1781_p5 = scmp.lt.s32.totalorder %s1775_s20, %s1775_s20 }
   0xe   :  { %p1782_p6 = por %p1781_p5, %p1780_p4 }
  0x10   :  { %p1783_p7 = pnand %p1782_p6, %p1776_p3 }
  0x12   :  { %1786 = shalt.err (!%p1783_p7)
}
  0x13   :  { %s1885_s21 = smov 128   ;;  %s1886_s22 = smov 8  }
  0x14   :  { %43 = dma.hbm_to_vmem [thread:$0]  %s2574_s1, 1024, %s38_s10, [#allocation8], %s1885_s21, %s1885_s21, %s1886_s22  }
  0x15   :  { %s1787_s27 = scalar_lea.hbm %s2573_s0, 512 }
  0x16   :  { %p1788_p8 = scmp.ne.s32.totalorder %s2573_s0, %s1787_s27  ;;  %p1791_p9 = scmp.lt.u32.totalorder %s1787_s27, %s2573_s0 }
  0x18   :  { %p1793_p10 = pnand %p1791_p9, %p1788_p8 }
  0x1a   :  { %1796 = shalt.err (!%p1793_p10)
}
  0x1b   :  { %s1797_s13 = scalar_lea.vmem %s1944_s12, 512  ;;  %p1802_p12 = scmp.lt.s32.totalorder %s1944_s12, %s1944_s12 }
  0x1c   :  { %p1798_p11 = scmp.ne.s32.totalorder %s1944_s12, %s1797_s13  ;;  %p1803_p13 = scmp.lt.s32.totalorder %s1797_s13, %s1797_s13 }
  0x1e   :  { %p1804_p0 = por %p1803_p13, %p1802_p12 }
  0x20   :  { %p1805_p1 = pnand %p1804_p0, %p1798_p11 }
  0x22   :  { %1808 = shalt.err (!%p1805_p1)
}
  0x23   :  { %31 = dma.hbm_to_vmem [thread:$0]  %s2573_s0, 512, %s1944_s12, [#allocation5], %s1885_s21, %s1885_s21, %s1886_s22  }
  0x24   :  { %s1887_s14 = smov [#allocation9]   ;;  %s1888_s16 = smov [#allocation10]  }
  0x25   :  { %s53_s15 = sshll.u32 %s1887_s14, 4  ;;  %s65_s17 = sshll.u32 %s1888_s16, 4  ;;  %s54_s15 = int_to_ptr.vmem [resolvable:$true] %s53_s15  ;;  %s1981_s17 = int_to_ptr.vmem [resolvable:$true] %s65_s17 }
  0x26   :  { %s1809_s20 = scalar_lea.hbm %s2577_s4, 2048 }
  0x27   :  { %p1810_p2 = scmp.ne.s32.totalorder %s2577_s4, %s1809_s20  ;;  %p1813_p3 = scmp.lt.u32.totalorder %s1809_s20, %s2577_s4 }
  0x29   :  { %p1815_p4 = pnand %p1813_p3, %p1810_p2 }
  0x2b   :  { %1818 = shalt.err (!%p1815_p4)
}
  0x2c   :  { %s1819_s0 = scalar_lea.vmem %s54_s15, 2048  ;;  %p1824_p6 = scmp.lt.s32.totalorder %s54_s15, %s54_s15 }
  0x2d   :  { %p1820_p5 = scmp.ne.s32.totalorder %s54_s15, %s1819_s0  ;;  %p1825_p7 = scmp.lt.s32.totalorder %s1819_s0, %s1819_s0 }
  0x2f   :  { %p1826_p8 = por %p1825_p7, %p1824_p6 }
  0x31   :  { %p1827_p9 = pnand %p1826_p8, %p1820_p5 }
  0x33   :  { %1830 = shalt.err (!%p1827_p9)
}
  0x34   :  { %59 = dma.hbm_to_vmem [thread:$0]  %s2577_s4, 2048, %s54_s15, [#allocation8], %s1885_s21, %s1885_s21, %s1886_s22  }
  0x35   :  { %s1831_s30 = scalar_lea.hbm %s2578_s5, 2048 }
  0x36   :  { %p1832_p10 = scmp.ne.s32.totalorder %s2578_s5, %s1831_s30  ;;  %p1835_p11 = scmp.lt.u32.totalorder %s1831_s30, %s2578_s5 }
  0x38   :  { %p1837_p12 = pnand %p1835_p11, %p1832_p10 }
  0x3a   :  { %1840 = shalt.err (!%p1837_p12)
}
  0x3b   :  { %s1841_s14 = scalar_lea.vmem %s1981_s17, 2048  ;;  %p1846_p0 = scmp.lt.s32.totalorder %s1981_s17, %s1981_s17 }
  0x3c   :  { %p1842_p13 = scmp.ne.s32.totalorder %s1981_s17, %s1841_s14  ;;  %p1847_p1 = scmp.lt.s32.totalorder %s1841_s14, %s1841_s14 }
  0x3e   :  { %p1848_p2 = por %p1847_p1, %p1846_p0 }
  0x40   :  { %p1849_p3 = pnand %p1848_p2, %p1842_p13 }
  0x42   :  { %1852 = shalt.err (!%p1849_p3)
}
  0x43   :  { %71 = dma.hbm_to_vmem [thread:$0]  %s2578_s5, 2048, %s1981_s17, [#allocation11], %s1885_s21, %s1885_s21, %s1886_s22  }
  0x44   :  { %1875 = dma.done.wait [#allocation5], 512  }
  0x45   :  { %1876 = vsyncadd [#allocation5], 4294966784 }
  0x46   :  { %1877 = dma.done.wait [#allocation8], 3072  }
  0x47   :  { %1878 = vsyncadd [#allocation8], 4294964224 }
  0x48   :  { %1879 = dma.done.wait [#allocation11], 2048  }
  0x49   :  { %1880 = vsyncadd [#allocation11], 4294965248  ;;  %v97_v0 = vld [vmem:[#allocation7] sm:$0xff]  ;;  %v98_v1 = vld [vmem:[#allocation7 + $0x8] sm:$0xff]  ;;  %vm116_vm0 = vcmask 523264   ;;  %v2583_v35 = vmov 0.0  }
  0x4a   :  { %v99_v2 = vld [vmem:[#allocation7 + $0x10] sm:$0xff]  ;;  %v105_v3 = vpack.c.bf16 %v98_v1, %v97_v0  ;;  %v100_v4 = vld [vmem:[#allocation7 + $0x18] sm:$0xff]  ;;  %v101_v6 = vld [vmem:[#allocation7 + $0x20] sm:$0xff]  ;;  %vm1890_vm1 = vmmov 0   ;;  %vm506_vm2 = vcmask 130112   ;;  %vm553_vm3 = vcmask 1041409  }
  0x4b   :  { %v106_v5 = vpack.c.bf16 %v100_v4, %v99_v2  ;;  %v102_v7 = vld [vmem:[#allocation7 + $0x28] sm:$0xff]  ;;  %v91_v8 = vld [vmem:[#allocation4] sm:$0xff]  ;;  %v103_v14 = vld [vmem:[#allocation7 + $0x30] sm:$0xff]  ;;  %vm555_vm4 = vcmask 1042434   ;;  %vm557_vm5 = vcmask 1043459   ;;  %vm559_vm6 = vcmask 1044484  }
  0x4c   :  { %1581 = vmatprep.subr.bf16.mxu0 %v105_v3  ;;  %v92_v9 = vld [vmem:[#allocation4 + $0x8] sm:$0xff]  ;;  %v107_v11 = vpack.c.bf16 %v102_v7, %v101_v6  ;;  %v174_v12 = vld [vmem:[#allocation9] sm:$0xff]  ;;  %v104_v15 = vld [vmem:[#allocation7 + $0x38] sm:$0xff]  ;;  %vm561_vm7 = vcmask 1045509   ;;  %vm564_vm8 = vcmask 128000   ;;  %vm910_vm9 = vcmask 130048  }
  0x4d   :  { %1582 = vmatpush3.bf16.msra.mxu0 %v105_v3  ;;  %v95_v10 = vpack.c.bf16 %v92_v9, %v91_v8  ;;  %v175_v13 = vld [vmem:[#allocation9 + $0x8] sm:$0xff]  ;;  %v176_v17 = vld [vmem:[#allocation9 + $0x10] sm:$0xff]  ;;  %v177_v18 = vld [vmem:[#allocation9 + $0x18] sm:$0xff]  ;;  %v108_v22 = vpack.c.bf16 %v104_v15, %v103_v14  ;;  %vm317_vm10 = vcmask 1045504   ;;  %vm1524_vm12 = vcmask 1040384   ;;  %s1893_s23 = smov [#allocation12]  }
  0x4e   :  { %1583 = vmatprep.subr.bf16.mxu0 %v106_v5  ;;  %v190_v16 = vpack.c.bf16 %v175_v13, %v174_v12  ;;  %v191_v19 = vpack.c.bf16 %v177_v18, %v176_v17  ;;  %v178_v20 = vld [vmem:[#allocation9 + $0x20] sm:$0xff]  ;;  %v179_v21 = vld [vmem:[#allocation9 + $0x28] sm:$0xff]  ;;  %v180_v24 = vld [vmem:[#allocation9 + $0x30] sm:$0xff]  ;;  %s1535_s24 = sshll.u32 %s1893_s23, 4  ;;  %s1536_s24 = int_to_ptr.vmem [resolvable:$true] %s1535_s24 }
  0x4f   :  { %1589 = vmatprep.mubr.msk.bf16.mxu0 %vm116_vm0, %v95_v10  ;;  %v192_v23 = vpack.c.bf16 %v179_v21, %v178_v20  ;;  %v181_v25 = vld [vmem:[#allocation9 + $0x38] sm:$0xff]  ;;  %v93_v26 = vld [vmem:[#allocation4 + $0x10] sm:$0xff]  ;;  %v249_v28 = vld [vmem:[#allocation10] sm:$0xff]  ;;  %v323_v20 = vlaneseq  ;;  %v1891_v21 = vmov 1966171168   ;;  %s1853_s25 = scalar_lea.vmem %s1536_s24, 32  ;;  %p1858_p5 = scmp.lt.s32.totalorder %s1536_s24, %s1536_s24 }
  0x50   :  { %1593 = vmatprep.subr.bf16.mxu1 %v190_v16  ;;  %v94_v27 = vld [vmem:[#allocation4 + $0x18] sm:$0xff]  ;;  %v250_v29 = vld [vmem:[#allocation10 + $0x8] sm:$0xff]  ;;  %v193_v30 = vpack.c.bf16 %v181_v25, %v180_v24  ;;  %v182_v32 = vld [vmem:[#allocation9 + $0x40] sm:$0xff]  ;;  %p1854_p4 = scmp.ne.s32.totalorder %s1536_s24, %s1853_s25  ;;  %p1859_p6 = scmp.lt.s32.totalorder %s1853_s25, %s1853_s25 }
  0x51   :  { %1584 = vmatpush3.bf16.msra.mxu0 %v106_v5  ;;  %1594 = vmatpush3.bf16.msra.mxu1 %v190_v16  ;;  %v96_v31 = vpack.c.bf16 %v94_v27, %v93_v26  ;;  %v183_v33 = vld [vmem:[#allocation9 + $0x48] sm:$0xff]  ;;  %v265_v34 = vpack.c.bf16 %v250_v29, %v249_v28  ;;  %v251_v36 = vld [vmem:[#allocation10 + $0x10] sm:$0xff]  ;;  %v252_v37 = vld [vmem:[#allocation10 + $0x18] sm:$0xff] }
  0x52   :  { %1585 = vmatprep.subr.bf16.mxu0 %v107_v11  ;;  %1595 = vmatprep.subr.bf16.mxu1 %v191_v19  ;;  %v194_v38 = vpack.c.bf16 %v183_v33, %v182_v32  ;;  %v184_v39 = vld [vmem:[#allocation9 + $0x50] sm:$0xff]  ;;  %v185_v40 = vld [vmem:[#allocation9 + $0x58] sm:$0xff]  ;;  %v266_v41 = vpack.c.bf16 %v252_v37, %v251_v36  ;;  %v253_v42 = vld [vmem:[#allocation10 + $0x20] sm:$0xff]  ;;  %p1860_p7 = por %p1859_p6, %p1858_p5 }
  0x53   :  { %v254_v43 = vld [vmem:[#allocation10 + $0x28] sm:$0xff]  ;;  %v195_v44 = vpack.c.bf16 %v185_v40, %v184_v39  ;;  %v255_v46 = vld [vmem:[#allocation10 + $0x30] sm:$0xff]  ;;  %v256_v47 = vld [vmem:[#allocation10 + $0x38] sm:$0xff] }
  0x54   :  { %v267_v45 = vpack.c.bf16 %v254_v43, %v253_v42  ;;  %v268_v48 = vpack.c.bf16 %v256_v47, %v255_v46  ;;  %v257_v49 = vld [vmem:[#allocation10 + $0x40] sm:$0xff]  ;;  %v258_v50 = vld [vmem:[#allocation10 + $0x48] sm:$0xff]  ;;  %v259_v52 = vld [vmem:[#allocation10 + $0x50] sm:$0xff]  ;;  %p1861_p8 = pnand %p1860_p7, %p1854_p4 }
  0x55   :  { %1586 = vmatpush3.bf16.msra.mxu0 %v107_v11  ;;  %1596 = vmatpush3.bf16.msra.mxu1 %v191_v19  ;;  %v269_v51 = vpack.c.bf16 %v258_v50, %v257_v49  ;;  %v260_v53 = vld [vmem:[#allocation10 + $0x58] sm:$0xff]  ;;  %v261_v55 = vld [vmem:[#allocation10 + $0x60] sm:$0xff]  ;;  %v262_v56 = vld [vmem:[#allocation10 + $0x68] sm:$0xff] }
  0x56   :  { %1587 = vmatprep.subr.bf16.mxu0 %v108_v22  ;;  %1597 = vmatprep.subr.bf16.mxu1 %v192_v23  ;;  %v270_v54 = vpack.c.bf16 %v260_v53, %v259_v52  ;;  %v271_v57 = vpack.c.bf16 %v262_v56, %v261_v55  ;;  %v263_v58 = vld [vmem:[#allocation10 + $0x70] sm:$0xff]  ;;  %v264_v59 = vld [vmem:[#allocation10 + $0x78] sm:$0xff]  ;;  %v247_v61 = vld [vmem:[%s2576_s3] sm:$0x3f] }
  0x57   :  { %v272_v60 = vpack.c.bf16 %v264_v59, %v263_v58  ;;  %v248_v62 = vpack.c.bf16 %v247_v61, %v247_v61  ;;  %v186_v63 = vld [vmem:[#allocation9 + $0x60] sm:$0xff]  ;;  %v187_v0 = vld [vmem:[#allocation9 + $0x68] sm:$0xff]  ;;  %v188_v2 = vld [vmem:[#allocation9 + $0x70] sm:$0xff] }
  0x58   :  { %v196_v1 = vpack.c.bf16 %v187_v0, %v186_v63  ;;  %v189_v3 = vld [vmem:[#allocation9 + $0x78] sm:$0xff]  ;;  %v1546_v6 = vld [vmem:[%s2575_s2] ss:$0 sm:$0xff] }
  0x59   :  { %1588 = vmatpush3.bf16.msra.mxu0 %v108_v22  ;;  %1598 = vmatpush3.bf16.msra.mxu1 %v192_v23  ;;  %v197_v4 = vpack.c.bf16 %v189_v3, %v188_v2  ;;  %v331_v22 = vunpack.c.l.s4 %v1891_v21  ;;  %v2044_v23 = vshrl.u32 %v323_v20, 7 }
  0x5a   :  { %1613 = vmatprep.subr.bf16.mxu0 %v2583_v35  ;;  %1599 = vmatprep.subr.bf16.mxu1 %v193_v30 }
  0x5b   :  { %2585 = vst [vmem:[#allocation17_spill] sm:$0xff] %v2044_v23  ;;  %v332_v24 = vunpack.c.0.s8 %v331_v22  ;;  %v2048_v37 = vsub.s32 0, %v2044_v23 }
  0x5c   :  { %1590 = vmatmul.mubr.msk.bf16.vlgmr.msra.gmra.mrb[0].mxu0 %vm116_vm0, %v96_v31 }
  0x5d   :  { %1614 = vmatpush3.bf16.msra.mxu0 %v265_v34  ;;  %1629 = vmatprep.mubr.msk.bf16.mxu0 %vm1890_vm1, %v2583_v35  ;;  %v335_v25 = vsub.s32 %v332_v24, %v2044_v23 }
  0x5e   :  { %1615 = vmatprep.subr.bf16.mxu0 %v2583_v35  ;;  %1600 = vmatpush3.bf16.msra.mxu1 %v193_v30 }
  0x5f   :  { %1601 = vmatprep.subr.bf16.mxu1 %v194_v38 }
  0x61   :  { %1616 = vmatpush3.bf16.msra.mxu0 %v266_v41 }
  0x62   :  { %1617 = vmatprep.subr.bf16.mxu0 %v2583_v35  ;;  %1602 = vmatpush3.bf16.msra.mxu1 %v194_v38 }
  0x63   :  { %1603 = vmatprep.subr.bf16.mxu1 %v195_v44 }
  0x65   :  { %1618 = vmatpush3.bf16.msra.mxu0 %v267_v45 }
  0x66   :  { %1619 = vmatprep.subr.bf16.mxu0 %v2583_v35  ;;  %1604 = vmatpush3.bf16.msra.mxu1 %v195_v44 }
  0x67   :  { %1605 = vmatprep.subr.bf16.mxu1 %v196_v1 }
  0x69   :  { %1620 = vmatpush3.bf16.msra.mxu0 %v268_v48 }
  0x6a   :  { %1621 = vmatprep.subr.bf16.mxu0 %v2583_v35  ;;  %1606 = vmatpush3.bf16.msra.mxu1 %v196_v1 }
  0x6b   :  { %1607 = vmatprep.subr.bf16.mxu1 %v197_v4 }
  0x6d   :  { %1622 = vmatpush3.bf16.msra.mxu0 %v269_v51 }
  0x6e   :  { %1623 = vmatprep.subr.bf16.mxu0 %v2583_v35  ;;  %1608 = vmatpush3.bf16.msra.mxu1 %v197_v4 }
  0x6f   :  { %1633 = vmatprep.subr.bf16.mxu1 %v2583_v35 }
  0x71   :  { %1624 = vmatpush3.bf16.msra.mxu0 %v270_v54 }
  0x72   :  { %1625 = vmatprep.subr.bf16.mxu0 %v2583_v35 }
  0x75   :  { %1626 = vmatpush3.bf16.msra.mxu0 %v271_v57 }
  0x76   :  { %1627 = vmatprep.subr.bf16.mxu0 %v2583_v35 }
  0x79   :  { %1628 = vmatpush3.bf16.msra.mxu0 %v272_v60 }
  0x7c   :  { %1630 = vmatmul.mubr.bf16.vlgmr.msra.gmra.mrb[4].mxu0 %v248_v62 }
 0x12f   :  { %v1591_v5 = vpop.f32.mrb[0].mxu0 }
 0x130   :  { %v157_v7 = vpop.f32.mrb[1].mxu0  ;;  %v166_v9 = vadd.f32 %v1591_v5, %v1546_v6 }
 0x131   :  { %v1592_v8 = vpop.f32.mrb[2].mxu0  ;;  %v158_v12 = vadd.f32 %v1546_v6, %v157_v7 }
 0x132   :  { %v169_v10 = vadd.f32 %v1592_v8, %v1546_v6  ;;  %v160_v11 = vpop.f32.mrb[3].mxu0 }
 0x133   :  { %v161_v13 = vadd.f32 %v1546_v6, %v160_v11 }
 0x134   :  { %v2037_v14 = vpack.c.bf16 %v169_v10, %v166_v9  ;;  %v2069_v9 = vld [vmem:[%s2579_s6] ss:$0 sm:$0xff] }
 0x135   :  { %v172_v15 = vpack.c.bf16 %v161_v13, %v158_v12 }
 0x137   :  { %1609 = vmatprep.mubr.bf16.mxu1 %v172_v15 }
 0x138   :  { %1610 = vmatmul.mubr.bf16.vlgmr.msra.gmra.mrb[0].mxu1 %v2037_v14 }
 0x139   :  { %1634 = vmatpush3.bf16.msra.mxu1 %v172_v15  ;;  %1635 = vmatprep.mubr.msk.bf16.mxu1 %vm1890_vm1, %v2583_v35 }
 0x13a   :  { %1639 = vmatprep.subr.bf16.mxu1 %v2583_v35 }
 0x14f   :  { %v307_v16 = vpop.f32.mrb[4].mxu0 }
 0x150   :  { %v1631_v17 = vpop.f32.mrb[5].mxu0  ;;  %v336_v26 = vrot.slane %v307_v16, %v335_v25  ;;  %v329_v27 = vcombine.high %v307_v16, %v307_v16 }
 0x151   :  { %v310_v18 = vpop.f32.mrb[6].mxu0 }
 0x152   :  { %v1632_v19 = vpop.f32.mrb[7].mxu0  ;;  %v344_v28 = vcombine.high %v336_v26, %v336_v26  ;;  %v343_v29 = vrot.slane %v329_v27, %v335_v25  ;;  %v352_v30 = vrot.slane %v336_v26, %v335_v25 }
 0x154   :  { %v366_v31 = vrot.slane %v344_v28, %v335_v25  ;;  %v345_v32 = vcombine.high %v343_v29, %v343_v29  ;;  %v359_v33 = vrot.slane %v343_v29, %v335_v25  ;;  %v374_v34 = vcombine.high %v352_v30, %v352_v30 }
 0x155   :  { %v379_v44 = vrot.slane %v352_v30, %v2048_v37 }
 0x156   :  { %v375_v36 = vcombine.high %v366_v31, %v366_v31  ;;  %v373_v38 = vrot.slane %v345_v32, %v335_v25  ;;  %v383_v39 = vrot.slane %v366_v31, %v2048_v37  ;;  %v387_v40 = vrot.slane %v374_v34, %v2048_v37 }
 0x157   :  { %v395_v42 = vrot.slane %v359_v33, %v2048_v37 }
 0x158   :  { %v391_v41 = vrot.slane %v375_v36, %v2048_v37  ;;  %v399_v43 = vrot.slane %v373_v38, %v2048_v37 }
 0x20b   :  { %v1611_v45 = vpop.f32.mrb[0].mxu1 }
 0x20c   :  { %v975_v46 = vmul.f32 %v1611_v45, %v383_v39  ;;  %v977_v47 = vmul.f32 %v1611_v45, %v387_v40  ;;  %v2056_v48 = vmul.f32 %v1611_v45, %v391_v41  ;;  %v2058_v49 = vmul.f32 %v1611_v45, %v395_v42  ;;  %v232_v50 = vpop.f32.mrb[1].mxu1 }
 0x20d   :  { %v2060_v51 = vmul.f32 %v1611_v45, %v399_v43  ;;  %v406_v52 = vmul.f32 %v379_v44, %v232_v50  ;;  %v410_v53 = vmul.f32 %v387_v40, %v232_v50  ;;  %v412_v54 = vmul.f32 %v391_v41, %v232_v50  ;;  %v1612_v55 = vpop.f32.mrb[2].mxu1 }
 0x20e   :  { %v414_v56 = vmul.f32 %v395_v42, %v232_v50  ;;  %v416_v57 = vmul.f32 %v399_v43, %v232_v50  ;;  %v974_v58 = vmul.f32 %v1612_v55, %v379_v44  ;;  %v235_v59 = vpop.f32.mrb[3].mxu1  ;;  %v976_v60 = vmul.f32 %v1612_v55, %v383_v39 }
 0x20f   :  { %v978_v61 = vmul.f32 %v1612_v55, %v387_v40  ;;  %v980_v62 = vmul.f32 %v1612_v55, %v391_v41  ;;  %v2062_v63 = vmul.f32 %v1612_v55, %v395_v42  ;;  %v2064_v0 = vmul.f32 %v1612_v55, %v399_v43 }
 0x210   :  { %v407_v1 = vmul.f32 %v379_v44, %v235_v59  ;;  %v409_v2 = vmul.f32 %v383_v39, %v235_v59  ;;  %v411_v3 = vmul.f32 %v387_v40, %v235_v59  ;;  %v413_v4 = vmul.f32 %v391_v41, %v235_v59 }
 0x211   :  { %v415_v5 = vmul.f32 %v395_v42, %v235_v59  ;;  %v417_v6 = vmul.f32 %v399_v43, %v235_v59  ;;  %v973_v7 = vmul.f32 %v1611_v45, %v379_v44  ;;  %v408_v8 = vmul.f32 %v383_v39, %v232_v50 }
 0x213   :  { %1658 = vtanh.f32 %v973_v7 }
 0x214   :  { %1660 = vtanh.f32 %v408_v8 }
 0x215   :  { %1662 = vtanh.f32 %v975_v46 }
 0x216   :  { %1664 = vtanh.f32 %v974_v58 }
 0x217   :  { %1666 = vtanh.f32 %v977_v47 }
 0x218   :  { %1668 = vtanh.f32 %v976_v60 }
 0x219   :  { %1670 = vtanh.f32 %v406_v52 }
 0x21a   :  { %1672 = vtanh.f32 %v978_v61 }
 0x21b   :  { %1674 = vtanh.f32 %v410_v53 }
 0x21c   :  { %1676 = vtanh.f32 %v980_v62 }
 0x21d   :  { %v1659_v10 = vpop.eup %1658  ;;  %1678 = vtanh.f32 %v412_v54 }
 0x21e   :  { %v1661_v11 = vpop.eup %1660  ;;  %v997_v12 = vmul.f32 %v1659_v10, %v2069_v9  ;;  %1680 = vtanh.f32 %v409_v2 }
 0x21f   :  { %v1663_v13 = vpop.eup %1662  ;;  %v438_v15 = vmul.f32 %v1661_v11, %v2069_v9  ;;  %1682 = vtanh.f32 %v414_v56 }
 0x220   :  { %v1665_v16 = vpop.eup %1664  ;;  %1009 = vadd.xlane.f32.xlu0 %v997_v12  ;;  %v999_v17 = vmul.f32 %v1663_v13, %v2069_v9  ;;  %1684 = vtanh.f32 %v411_v3  ;;  %v2101_v12 = vand.u32 127, %v323_v20 }
 0x221   :  { %452 = vadd.xlane.f32.xlu1 %v438_v15  ;;  %v1667_v18 = vpop.eup %1666  ;;  %v998_v19 = vmul.f32 %v1665_v16, %v2069_v9  ;;  %1686 = vtanh.f32 %v416_v57  ;;  %v2107_v15 = vstv %s2580_s7 }
 0x222   :  { %v1669_v21 = vpop.eup %1668  ;;  %v1001_v22 = vmul.f32 %v1667_v18, %v2069_v9  ;;  %1688 = vtanh.f32 %v413_v4 }
 0x223   :  { %v1671_v24 = vpop.eup %1670  ;;  %v1000_v25 = vmul.f32 %v1669_v21, %v2069_v9  ;;  %1690 = vtanh.f32 %v407_v1 }
 0x224   :  { %1013 = vadd.xlane.f32.xlu0 %v999_v17  ;;  %v1673_v26 = vpop.eup %1672  ;;  %v436_v27 = vmul.f32 %v1671_v24, %v2069_v9  ;;  %1692 = vtanh.f32 %v415_v5  ;;  %v2111_v17 = vsub.s32 %v2101_v12, %v2044_v23 }
 0x225   :  { %1011 = vadd.xlane.f32.xlu1 %v998_v19  ;;  %v1675_v28 = vpop.eup %1674  ;;  %v1002_v29 = vmul.f32 %v1673_v26, %v2069_v9  ;;  %1694 = vtanh.f32 %v2056_v48 }
 0x226   :  { %v1677_v30 = vpop.eup %1676  ;;  %v440_v31 = vmul.f32 %v1675_v28, %v2069_v9  ;;  %1696 = vtanh.f32 %v417_v6 }
 0x227   :  { %v1679_v32 = vpop.eup %1678  ;;  %v1004_v33 = vmul.f32 %v1677_v30, %v2069_v9  ;;  %1698 = vtanh.f32 %v2058_v49 }
 0x228   :  { %1017 = vadd.xlane.f32.xlu0 %v1001_v22  ;;  %v1681_v34 = vpop.eup %1680  ;;  %v442_v36 = vmul.f32 %v1679_v32, %v2069_v9  ;;  %1700 = vtanh.f32 %v2062_v63 }
 0x229   :  { %1015 = vadd.xlane.f32.xlu1 %v1000_v25  ;;  %v1683_v38 = vpop.eup %1682  ;;  %v439_v39 = vmul.f32 %v1681_v34, %v2069_v9  ;;  %1702 = vtanh.f32 %v2060_v51 }
 0x22a   :  { %v1685_v40 = vpop.eup %1684  ;;  %v444_v41 = vmul.f32 %v1683_v38, %v2069_v9  ;;  %1704 = vtanh.f32 %v2064_v0 }
 0x22b   :  { %v1687_v42 = vpop.eup %1686  ;;  %v441_v43 = vmul.f32 %v1685_v40, %v2069_v9 }
 0x22c   :  { %448 = vadd.xlane.f32.xlu0 %v436_v27  ;;  %v1689_v44 = vpop.eup %1688  ;;  %v446_v45 = vmul.f32 %v1687_v42, %v2069_v9 }
 0x22d   :  { %1019 = vadd.xlane.f32.xlu1 %v1002_v29  ;;  %v1691_v46 = vpop.eup %1690  ;;  %v443_v47 = vmul.f32 %v1689_v44, %v2069_v9 }
 0x22e   :  { %v1693_v48 = vpop.eup %1692  ;;  %v437_v50 = vmul.f32 %v1691_v46, %v2069_v9 }
 0x22f   :  { %v1695_v52 = vpop.eup %1694  ;;  %v445_v49 = vmul.f32 %v1693_v48, %v2069_v9 }
 0x230   :  { %456 = vadd.xlane.f32.xlu0 %v440_v31  ;;  %v1697_v53 = vpop.eup %1696  ;;  %v1003_v54 = vmul.f32 %v1695_v52, %v2069_v9 }
 0x231   :  { %1023 = vadd.xlane.f32.xlu1 %v1004_v33  ;;  %v1699_v55 = vpop.eup %1698  ;;  %v447_v56 = vmul.f32 %v1697_v53, %v2069_v9 }
 0x232   :  { %v1701_v57 = vpop.eup %1700  ;;  %v1005_v51 = vmul.f32 %v1699_v55, %v2069_v9 }
 0x233   :  { %v1703_v58 = vpop.eup %1702  ;;  %v1006_v59 = vmul.f32 %v1701_v57, %v2069_v9 }
 0x234   :  { %460 = vadd.xlane.f32.xlu0 %v442_v36  ;;  %v1705_v60 = vpop.eup %1704  ;;  %v1007_v61 = vmul.f32 %v1703_v58, %v2069_v9 }
 0x235   :  { %454 = vadd.xlane.f32.xlu1 %v439_v39  ;;  %v1008_v62 = vmul.f32 %v1705_v60, %v2069_v9  ;;  %v501_v9 = vadd.s32 4294967288, %v2101_v12 }
 0x237   :  { %v2117_v20 = vsub.s32 %v501_v9, %v2044_v23 }
 0x238   :  { %464 = vadd.xlane.f32.xlu0 %v444_v41 }
 0x239   :  { %458 = vadd.xlane.f32.xlu1 %v441_v43 }
 0x23c   :  { %468 = vadd.xlane.f32.xlu0 %v446_v45 }
 0x23d   :  { %462 = vadd.xlane.f32.xlu1 %v443_v47 }
 0x240   :  { %450 = vadd.xlane.f32.xlu0 %v437_v50 }
 0x241   :  { %466 = vadd.xlane.f32.xlu1 %v445_v49 }
 0x244   :  { %1021 = vadd.xlane.f32.xlu0 %v1003_v54 }
 0x245   :  { %470 = vadd.xlane.f32.xlu1 %v447_v56 }
 0x248   :  { %1025 = vadd.xlane.f32.xlu0 %v1005_v51 }
 0x249   :  { %1027 = vadd.xlane.f32.xlu1 %v1006_v59 }
 0x24c   :  { %1029 = vadd.xlane.f32.xlu0 %v1007_v61 }
 0x24d   :  { %1031 = vadd.xlane.f32.xlu1 %v1008_v62 }
 0x2ad   :  { %v1010_v63 = vpop.xlane.xlu0 %1009 }
 0x2ae   :  { %v453_v0 = vpop.xlane.xlu1 %452  ;;  %v2132_v27 = vadd.f32 %v1010_v63, %v2107_v15 }
 0x2af   :  { %v2114_v18 = vadd.f32 %v2107_v15, %v453_v0 }
 0x2b1   :  { %v1014_v1 = vpop.xlane.xlu0 %1013  ;;  %v511_v28 = vrot.slane %v2114_v18, %v2111_v17 }
 0x2b2   :  { %v1012_v2 = vpop.xlane.xlu1 %1011  ;;  %v2137_v29 = vadd.f32 %v1014_v1, %v2107_v15 }
 0x2b3   :  { %v2154_v39 = vadd.f32 %v1012_v2, %v2107_v15 }
 0x2b5   :  { %v1018_v3 = vpop.xlane.xlu0 %1017 }
 0x2b6   :  { %v1016_v4 = vpop.xlane.xlu1 %1015  ;;  %v2157_v40 = vadd.f32 %v1018_v3, %v2107_v15 }
 0x2b7   :  { %v2165_v43 = vadd.f32 %v1016_v4, %v2107_v15 }
 0x2b9   :  { %v449_v5 = vpop.xlane.xlu0 %448  ;;  %v1073_v61 = vrot.slane %v2165_v43, %v2117_v20 }
 0x2ba   :  { %v1020_v6 = vpop.xlane.xlu1 %1019  ;;  %v2126_v25 = vadd.f32 %v2107_v15, %v449_v5 }
 0x2bb   :  { %v2174_v47 = vadd.f32 %v1020_v6, %v2107_v15  ;;  %v1069_v6 = vrot.slane %v2137_v29, %v2111_v17 }
 0x2bc   :  { %v500_v44 = vrot.slane %v2126_v25, %v2111_v17 }
 0x2bd   :  { %v457_v7 = vpop.xlane.xlu0 %456 }
 0x2be   :  { %v1024_v8 = vpop.xlane.xlu1 %1023  ;;  %v2140_v30 = vadd.f32 %v2107_v15, %v457_v7  ;;  %v1082_v7 = vrot.slane %v2174_v47, %v2117_v20 }
 0x2bf   :  { %v2200_v62 = vadd.f32 %v1024_v8, %v2107_v15 }
 0x2c0   :  { %v520_v48 = vrot.slane %v2140_v30, %v2111_v17 }
 0x2c1   :  { %v461_v10 = vpop.xlane.xlu0 %460 }
 0x2c2   :  { %v455_v11 = vpop.xlane.xlu1 %454  ;;  %v2143_v32 = vadd.f32 %v2107_v15, %v461_v10 }
 0x2c3   :  { %v2120_v21 = vadd.f32 %v2107_v15, %v455_v11 }
 0x2c4   :  { %v529_v53 = vrot.slane %v2143_v32, %v2111_v17 }
 0x2c5   :  { %v465_v13 = vpop.xlane.xlu0 %464  ;;  %v515_v33 = vrot.slane %v2120_v21, %v2117_v20 }
 0x2c6   :  { %v459_v16 = vpop.xlane.xlu1 %458  ;;  %v2148_v34 = vadd.f32 %v2107_v15, %v465_v13  ;;  %v1064_v13 = vrot.slane %v2154_v39, %v2117_v20 }
 0x2c7   :  { %v2123_v24 = vadd.f32 %v2107_v15, %v459_v16  ;;  %v516_v54 = vsel %vm506_vm2, %v515_v33, %v511_v28  ;;  %v1078_v28 = vrot.slane %v2157_v40, %v2111_v17 }
 0x2c8   :  { %v538_v55 = vrot.slane %v2148_v34, %v2111_v17 }
 0x2c9   :  { %v469_v19 = vpop.xlane.xlu0 %468  ;;  %v524_v41 = vrot.slane %v2123_v24, %v2117_v20 }
 0x2ca   :  { %v463_v22 = vpop.xlane.xlu1 %462  ;;  %v2179_v50 = vadd.f32 %v2107_v15, %v469_v19 }
 0x2cb   :  { %v2129_v26 = vadd.f32 %v2107_v15, %v463_v22  ;;  %v525_v51 = vsel %vm506_vm2, %v524_v41, %v520_v48  ;;  %v1060_v22 = vrot.slane %v2132_v27, %v2111_v17  ;;  %v1091_v41 = vrot.slane %v2200_v62, %v2117_v20 }
 0x2cc   :  { %v547_v1 = vrot.slane %v2179_v50, %v2111_v17  ;;  %v1083_v48 = vsel %vm506_vm2, %v1082_v7, %v1078_v28 }
 0x2cd   :  { %v451_v31 = vpop.xlane.xlu0 %450  ;;  %v533_v45 = vrot.slane %v2129_v26, %v2117_v20 }
 0x2ce   :  { %v2151_v36 = vadd.f32 %v2107_v15, %v451_v31  ;;  %v467_v38 = vpop.xlane.xlu1 %466 }
 0x2cf   :  { %v2162_v42 = vadd.f32 %v2107_v15, %v467_v38  ;;  %v534_v63 = vsel %vm506_vm2, %v533_v45, %v529_v53  ;;  %v1074_v38 = vsel %vm506_vm2, %v1073_v61, %v1069_v6  ;;  %v1065_v53 = vsel %vm506_vm2, %v1064_v13, %v1060_v22 }
 0x2d0   :  { %v505_v46 = vrot.slane %v2151_v36, %v2117_v20  ;;  %v2272_v13 = vsub.s32 2, %v2044_v23 }
 0x2d1   :  { %v542_v52 = vrot.slane %v2162_v42, %v2117_v20  ;;  %v1022_v49 = vpop.xlane.xlu0 %1021 }
 0x2d2   :  { %v507_v56 = vsel %vm506_vm2, %v505_v46, %v500_v44  ;;  %v471_v57 = vpop.xlane.xlu1 %470  ;;  %v2192_v59 = vadd.f32 %v1022_v49, %v2107_v15 }
 0x2d3   :  { %v554_v58 = vsel %vm553_vm3, %v516_v54, %v507_v56  ;;  %v2195_v60 = vadd.f32 %v2107_v15, %v471_v57  ;;  %v543_v4 = vsel %vm506_vm2, %v542_v52, %v538_v55  ;;  %v1111_v56 = vsel %vm553_vm3, %v1074_v38, %v1065_v53 }
 0x2d4   :  { %v556_v0 = vsel %vm555_vm4, %v525_v51, %v554_v58  ;;  %v1087_v9 = vrot.slane %v2192_v59, %v2111_v17  ;;  %v1112_v61 = vsel %vm555_vm4, %v1083_v48, %v1111_v56  ;;  %v2288_v48 = vsub.s32 4, %v2044_v23 }
 0x2d5   :  { %v551_v2 = vrot.slane %v2195_v60, %v2117_v20  ;;  %v1026_v3 = vpop.xlane.xlu0 %1025  ;;  %v558_v5 = vsel %vm557_vm5, %v534_v63, %v556_v0  ;;  %v2292_v53 = vsub.s32 5, %v2044_v23 }
 0x2d6   :  { %v2215_v8 = vadd.f32 %v1026_v3, %v2107_v15  ;;  %v1028_v10 = vpop.xlane.xlu1 %1027  ;;  %v560_v11 = vsel %vm559_vm6, %v543_v4, %v558_v5  ;;  %v1092_v54 = vsel %vm506_vm2, %v1091_v41, %v1087_v9  ;;  %v1892_v3 = vmov 0  }
 0x2d7   :  { %v2223_v16 = vadd.f32 %v1028_v10, %v2107_v15  ;;  %v552_v19 = vsel %vm506_vm2, %v551_v2, %v547_v1  ;;  %v1113_v63 = vsel %vm557_vm5, %v1092_v54, %v1112_v61  ;;  %1657 = vset.pattern.permute.xlu0 %v1892_v3  ;;  %1656 = vset.pattern.permute.xlu1 %v1892_v3  ;;  %v2263_v5 = vsub.s32 1, %v2044_v23 }
 0x2d8   :  { %v1096_v31 = vrot.slane %v2215_v8, %v2111_v17  ;;  %v562_v33 = vsel %vm561_vm7, %v552_v19, %v560_v11 }
 0x2d9   :  { %v1100_v44 = vrot.slane %v2223_v16, %v2117_v20  ;;  %v1030_v45 = vpop.xlane.xlu0 %1029  ;;  %v565_v46 = vsel %vm564_vm8, %v562_v33, -inf  ;;  %v2279_v33 = vsub.s32 3, %v2044_v23 }
 0x2da   :  { %v2241_v52 = vadd.f32 %v1030_v45, %v2107_v15  ;;  %v1032_v49 = vpop.xlane.xlu1 %1031  ;;  %566 = vmax.xlane.f32.xlu0 %v565_v46 }
 0x2db   :  { %v2246_v55 = vadd.f32 %v1032_v49, %v2107_v15  ;;  %v1101_v51 = vsel %vm506_vm2, %v1100_v44, %v1096_v31 }
 0x2dc   :  { %v1105_v57 = vrot.slane %v2241_v52, %v2111_v17  ;;  %v1114_v1 = vsel %vm559_vm6, %v1101_v51, %v1113_v63 }
 0x2dd   :  { %v1109_v58 = vrot.slane %v2246_v55, %v2117_v20 }
 0x2df   :  { %v1110_v0 = vsel %vm506_vm2, %v1109_v58, %v1105_v57 }
 0x2e0   :  { %v1115_v15 = vsel %vm561_vm7, %v1110_v0, %v1114_v1 }
 0x2e1   :  { %v1117_v2 = vsel %vm564_vm8, %v1115_v15, -inf }
 0x2e2   :  { %1118 = vmax.xlane.f32.xlu1 %v1117_v2 }
 0x367   :  { %v567_v41 = vpop.xlane.xlu0 %566 }
 0x36f   :  { %v2260_v4 = vpop.xlane.xlu1 %1118 }
 0x370   :  { %v1124_v6 = vrot.slane %v2260_v4, %v2048_v37  ;;  %v1128_v7 = vrot.slane %v2260_v4, %v2263_v5  ;;  %v1132_v9 = vrot.slane %v2260_v4, %v2272_v13 }
 0x372   :  { %v1151_v10 = vsub.f32 %v2132_v27, %v1124_v6  ;;  %v1152_v11 = vsub.f32 %v2154_v39, %v1124_v6  ;;  %v1153_v19 = vsub.f32 %v2137_v29, %v1128_v7  ;;  %v1154_v28 = vsub.f32 %v2165_v43, %v1128_v7 }
 0x373   :  { %v1136_v27 = vrot.slane %v2260_v4, %v2279_v33  ;;  %v1155_v39 = vsub.f32 %v2157_v40, %v1132_v9  ;;  %v1156_v44 = vsub.f32 %v2174_v47, %v1132_v9  ;;  %v572_v29 = vrot.slane %v567_v41, %v2048_v37 }
 0x374   :  { %v1163_v22 = vmul.f32 1.442695, %v1151_v10  ;;  %v1165_v31 = vmul.f32 1.442695, %v1152_v11  ;;  %v1167_v38 = vmul.f32 1.442695, %v1153_v19  ;;  %v576_v47 = vrot.slane %v567_v41, %v2263_v5 }
 0x375   :  { %v1169_v45 = vmul.f32 1.442695, %v1154_v28  ;;  %v1157_v43 = vsub.f32 %v2192_v59, %v1136_v27  ;;  %v1171_v46 = vmul.f32 1.442695, %v1155_v39  ;;  %v1158_v49 = vsub.f32 %v2200_v62, %v1136_v27 }
 0x376   :  { %1706 = vpow2.f32 %v1163_v22  ;;  %v1173_v40 = vmul.f32 1.442695, %v1156_v44  ;;  %v600_v54 = vsub.f32 %v2151_v36, %v572_v29  ;;  %v2297_v59 = vrot.slane %v567_v41, %v2288_v48 }
 0x377   :  { %1708 = vpow2.f32 %v1165_v31  ;;  %v1175_v56 = vmul.f32 1.442695, %v1157_v43  ;;  %v599_v57 = vsub.f32 %v2126_v25, %v572_v29  ;;  %v1177_v51 = vmul.f32 1.442695, %v1158_v49 }
 0x378   :  { %1710 = vpow2.f32 %v1167_v38  ;;  %v601_v61 = vsub.f32 %v2114_v18, %v576_v47  ;;  %v613_v63 = vmul.f32 1.442695, %v600_v54  ;;  %v2308_v36 = vrot.slane %v567_v41, %v2292_v53 }
 0x379   :  { %1712 = vpow2.f32 %v1169_v45  ;;  %v608_v25 = vsub.f32 %v2162_v42, %v2297_v59  ;;  %v611_v0 = vmul.f32 1.442695, %v599_v57  ;;  %v580_v18 = vrot.slane %v567_v41, %v2272_v13 }
 0x37a   :  { %1714 = vpow2.f32 %v1171_v46  ;;  %v602_v2 = vsub.f32 %v2120_v21, %v576_v47  ;;  %v615_v3 = vmul.f32 1.442695, %v601_v61  ;;  %v610_v6 = vsub.f32 %v2195_v60, %v2308_v36 }
 0x37b   :  { %1716 = vpow2.f32 %v1173_v40  ;;  %v629_v42 = vmul.f32 1.442695, %v608_v25  ;;  %v2324_v7 = vrot.slane %v2260_v4, %v2288_v48  ;;  %v603_v21 = vsub.f32 %v2140_v30, %v580_v18 }
 0x37c   :  { %1718 = vpow2.f32 %v1175_v56  ;;  %v617_v9 = vmul.f32 1.442695, %v602_v2  ;;  %v633_v60 = vmul.f32 1.442695, %v610_v6  ;;  %v1144_v19 = vrot.slane %v2260_v4, %v2292_v53 }
 0x37d   :  { %1720 = vpow2.f32 %v1177_v51  ;;  %v1160_v22 = vsub.f32 %v2223_v16, %v2324_v7  ;;  %v584_v30 = vrot.slane %v567_v41, %v2279_v33  ;;  %v604_v27 = vsub.f32 %v2123_v24, %v580_v18 }
 0x37e   :  { %1722 = vpow2.f32 %v613_v63  ;;  %v619_v39 = vmul.f32 1.442695, %v603_v21  ;;  %v1162_v4 = vsub.f32 %v2246_v55, %v1144_v19  ;;  %v607_v40 = vsub.f32 %v2148_v34, %v2297_v59 }
 0x37f   :  { %1724 = vpow2.f32 %v611_v0  ;;  %v1181_v38 = vmul.f32 1.442695, %v1160_v22  ;;  %v605_v45 = vsub.f32 %v2143_v32, %v584_v30  ;;  %v621_v41 = vmul.f32 1.442695, %v604_v27 }
 0x380   :  { %v2300_v58 = vpop.eup %1706  ;;  %1726 = vpow2.f32 %v615_v3  ;;  %v1185_v24 = vmul.f32 1.442695, %v1162_v4  ;;  %v606_v55 = vsub.f32 %v2129_v26, %v584_v30  ;;  %v609_v56 = vsub.f32 %v2179_v50, %v2308_v36 }
 0x381   :  { %v2302_v62 = vpop.eup %1708  ;;  %1200 = vperm.xlu1 %1656, %v2300_v58   ;;  %1728 = vpow2.f32 %v629_v42  ;;  %v623_v46 = vmul.f32 1.442695, %v605_v45  ;;  %v627_v57 = vmul.f32 1.442695, %v607_v40  ;;  %v1159_v61 = vsub.f32 %v2215_v8, %v2324_v7 }
 0x382   :  { %1203 = vperm.xlu0 %1657, %v2302_v62   ;;  %v2312_v1 = vpop.eup %1710  ;;  %1730 = vpow2.f32 %v617_v9  ;;  %v625_v47 = vmul.f32 1.442695, %v606_v55  ;;  %v631_v59 = vmul.f32 1.442695, %v609_v56  ;;  %v1161_v50 = vsub.f32 %v2241_v52, %v1144_v19 }
 0x383   :  { %v2314_v15 = vpop.eup %1712  ;;  %1732 = vpow2.f32 %v633_v60  ;;  %v1179_v36 = vmul.f32 1.442695, %v1159_v61 }
 0x384   :  { %v2326_v10 = vpop.eup %1714  ;;  %1734 = vpow2.f32 %v619_v39  ;;  %v1183_v0 = vmul.f32 1.442695, %v1161_v50 }
 0x385   :  { %1206 = vperm.xlu1 %1656, %v2312_v1   ;;  %v2328_v11 = vpop.eup %1716  ;;  %1736 = vpow2.f32 %v1181_v38 }
 0x386   :  { %1209 = vperm.xlu0 %1657, %v2314_v15   ;;  %v2337_v28 = vpop.eup %1718  ;;  %1738 = vpow2.f32 %v621_v41 }
 0x387   :  { %v2339_v31 = vpop.eup %1720  ;;  %1740 = vpow2.f32 %v1185_v24 }
 0x388   :  { %v2346_v44 = vpop.eup %1722  ;;  %1742 = vpow2.f32 %v623_v46 }
 0x389   :  { %1212 = vperm.xlu1 %1656, %v2326_v10   ;;  %v2348_v16 = vpop.eup %1724  ;;  %1744 = vpow2.f32 %v625_v47 }
 0x38a   :  { %1215 = vperm.xlu0 %1657, %v2328_v11   ;;  %v2353_v29 = vpop.eup %1726  ;;  %1746 = vpow2.f32 %v627_v57 }
 0x38b   :  { %v2355_v43 = vpop.eup %1728  ;;  %1748 = vpow2.f32 %v631_v59 }
 0x38c   :  { %v2360_v32 = vpop.eup %1730  ;;  %1750 = vpow2.f32 %v1179_v36 }
 0x38d   :  { %1218 = vperm.xlu1 %1656, %v2337_v28   ;;  %v2362_v49 = vpop.eup %1732  ;;  %1752 = vpow2.f32 %v1183_v0 }
 0x38e   :  { %1221 = vperm.xlu0 %1657, %v2339_v31   ;;  %v2368_v54 = vpop.eup %1734 }
 0x38f   :  { %v2370_v26 = vpop.eup %1736 }
 0x390   :  { %v2376_v51 = vpop.eup %1738 }
 0x391   :  { %651 = vperm.xlu1 %1656, %v2346_v44   ;;  %v2378_v34 = vpop.eup %1740 }
 0x392   :  { %648 = vperm.xlu0 %1657, %v2348_v16   ;;  %v2384_v63 = vpop.eup %1742 }
 0x393   :  { %v2388_v25 = vpop.eup %1744 }
 0x394   :  { %v2391_v18 = vpop.eup %1746 }
 0x395   :  { %654 = vperm.xlu1 %1656, %v2353_v29   ;;  %v2394_v8 = vpop.eup %1748 }
 0x396   :  { %675 = vperm.xlu0 %1657, %v2355_v43   ;;  %v2397_v2 = vpop.eup %1750 }
 0x397   :  { %v2400_v52 = vpop.eup %1752 }
 0x399   :  { %657 = vperm.xlu1 %1656, %v2360_v32  }
 0x39a   :  { %681 = vperm.xlu0 %1657, %v2362_v49  }
 0x39d   :  { %660 = vperm.xlu1 %1656, %v2368_v54  }
 0x39e   :  { %1227 = vperm.xlu0 %1657, %v2370_v26  }
 0x3a1   :  { %663 = vperm.xlu1 %1656, %v2376_v51  }
 0x3a2   :  { %1233 = vperm.xlu0 %1657, %v2378_v34  }
 0x3a5   :  { %666 = vperm.xlu1 %1656, %v2384_v63  }
 0x3a9   :  { %669 = vperm.xlu1 %1656, %v2388_v25  }
 0x3ad   :  { %672 = vperm.xlu1 %1656, %v2391_v18  }
 0x3b1   :  { %678 = vperm.xlu1 %1656, %v2394_v8  }
 0x3b5   :  { %1224 = vperm.xlu1 %1656, %v2397_v2  }
 0x3b9   :  { %1230 = vperm.xlu1 %1656, %v2400_v52  }
 0x400   :  { %v1201_v3 = vpop.permute.xlu1 %1200 }
 0x401   :  { %v1204_v42 = vpop.permute.xlu0 %1203 }
 0x404   :  { %v1207_v6 = vpop.permute.xlu1 %1206 }
 0x405   :  { %v1210_v21 = vpop.permute.xlu0 %1209 }
 0x408   :  { %v1213_v7 = vpop.permute.xlu1 %1212 }
 0x409   :  { %v1216_v19 = vpop.permute.xlu0 %1215 }
 0x40c   :  { %v1219_v9 = vpop.permute.xlu1 %1218 }
 0x40d   :  { %v1222_v30 = vpop.permute.xlu0 %1221 }
 0x410   :  { %v652_v60 = vpop.permute.xlu1 %651 }
 0x411   :  { %v649_v4 = vpop.permute.xlu0 %648  ;;  %v690_v47 = vrot.slane %v652_v60, %v2117_v20 }
 0x412   :  { %v686_v56 = vrot.slane %v649_v4, %v2111_v17 }
 0x414   :  { %v655_v22 = vpop.permute.xlu1 %654  ;;  %v691_v60 = vsel %vm506_vm2, %v690_v47, %v686_v56  ;;  %v1242_v56 = vrot.slane %v1204_v42, %v2117_v20 }
 0x415   :  { %v676_v45 = vpop.permute.xlu0 %675  ;;  %v695_v57 = vrot.slane %v655_v22, %v2111_v17  ;;  %v1238_v22 = vrot.slane %v1201_v3, %v2111_v17  ;;  %v1256_v3 = vrot.slane %v1213_v7, %v2111_v17 }
 0x416   :  { %v726_v35 = vrot.slane %v676_v45, %v2117_v20 }
 0x418   :  { %v658_v27 = vpop.permute.xlu1 %657 }
 0x419   :  { %v699_v55 = vrot.slane %v658_v27, %v2117_v20  ;;  %v682_v46 = vpop.permute.xlu0 %681 }
 0x41a   :  { %v735_v45 = vrot.slane %v682_v46, %v2117_v20 }
 0x41b   :  { %v700_v36 = vsel %vm506_vm2, %v699_v55, %v695_v57  ;;  %v1251_v57 = vrot.slane %v1210_v21, %v2117_v20 }
 0x41c   :  { %v661_v39 = vpop.permute.xlu1 %660 }
 0x41d   :  { %v704_v61 = vrot.slane %v661_v39, %v2111_v17  ;;  %v737_v39 = vsel %vm553_vm3, %v700_v36, %v691_v60  ;;  %v1228_v23 = vpop.permute.xlu0 %1227 }
 0x420   :  { %v664_v38 = vpop.permute.xlu1 %663 }
 0x421   :  { %v708_v40 = vrot.slane %v664_v38, %v2117_v20 }
 0x423   :  { %v709_v38 = vsel %vm506_vm2, %v708_v40, %v704_v61  ;;  %v1265_v61 = vrot.slane %v1219_v9, %v2111_v17  ;;  %v1234_v9 = vpop.permute.xlu0 %1233 }
 0x424   :  { %v667_v41 = vpop.permute.xlu1 %666  ;;  %v738_v40 = vsel %vm555_vm4, %v709_v38, %v737_v39 }
 0x425   :  { %v713_v0 = vrot.slane %v667_v41, %v2111_v17 }
 0x428   :  { %v670_v24 = vpop.permute.xlu1 %669 }
 0x429   :  { %v717_v59 = vrot.slane %v670_v24, %v2117_v20  ;;  %v1247_v24 = vrot.slane %v1207_v6, %v2111_v17  ;;  %v1260_v6 = vrot.slane %v1216_v19, %v2117_v20 }
 0x42b   :  { %v718_v4 = vsel %vm506_vm2, %v717_v59, %v713_v0  ;;  %v1252_v0 = vsel %vm506_vm2, %v1251_v57, %v1247_v24  ;;  %v1261_v19 = vsel %vm506_vm2, %v1260_v6, %v1256_v3 }
 0x42c   :  { %v673_v50 = vpop.permute.xlu1 %672  ;;  %v739_v59 = vsel %vm557_vm5, %v718_v4, %v738_v40 }
 0x42d   :  { %v722_v27 = vrot.slane %v673_v50, %v2111_v17 }
 0x42f   :  { %v727_v55 = vsel %vm506_vm2, %v726_v35, %v722_v27  ;;  %v1269_v35 = vrot.slane %v1222_v30, %v2117_v20  ;;  %v1278_v27 = vrot.slane %v1228_v23, %v2117_v20  ;;  %v1243_v30 = vsel %vm506_vm2, %v1242_v56, %v1238_v22 }
 0x430   :  { %v679_v41 = vpop.permute.xlu1 %678  ;;  %v740_v46 = vsel %vm559_vm6, %v727_v55, %v739_v59  ;;  %v1289_v60 = vsel %vm553_vm3, %v1252_v0, %v1243_v30  ;;  %v1287_v55 = vrot.slane %v1234_v9, %v2117_v20 }
 0x431   :  { %v731_v47 = vrot.slane %v679_v41, %v2111_v17  ;;  %v1270_v38 = vsel %vm506_vm2, %v1269_v35, %v1265_v61  ;;  %v1290_v24 = vsel %vm555_vm4, %v1261_v19, %v1289_v60 }
 0x432   :  { %v1291_v57 = vsel %vm557_vm5, %v1270_v38, %v1290_v24 }
 0x433   :  { %v736_v21 = vsel %vm506_vm2, %v735_v45, %v731_v47 }
 0x434   :  { %v1225_v50 = vpop.permute.xlu1 %1224  ;;  %v741_v36 = vsel %vm561_vm7, %v736_v21, %v740_v46 }
 0x435   :  { %v1274_v42 = vrot.slane %v1225_v50, %v2111_v17  ;;  %v743_v7 = vsel %vm564_vm8, %v741_v36, 0.0 }
 0x436   :  { %744 = vadd.xlane.f32.xlu1 %v743_v7 }
 0x437   :  { %v1279_v4 = vsel %vm506_vm2, %v1278_v27, %v1274_v42 }
 0x438   :  { %v1231_v39 = vpop.permute.xlu1 %1230  ;;  %v1292_v45 = vsel %vm559_vm6, %v1279_v4, %v1291_v57 }
 0x439   :  { %v1283_v41 = vrot.slane %v1231_v39, %v2111_v17 }
 0x43b   :  { %v1288_v23 = vsel %vm506_vm2, %v1287_v55, %v1283_v41 }
 0x43c   :  { %v1293_v22 = vsel %vm561_vm7, %v1288_v23, %v1292_v45 }
 0x43d   :  { %v1295_v40 = vsel %vm564_vm8, %v1293_v22, 0.0 }
 0x43e   :  { %1296 = vadd.xlane.f32.xlu0 %v1295_v40 }
 0x4c3   :  { %v745_v56 = vpop.xlane.xlu1 %744 }
 0x4cb   :  { %v1297_v47 = vpop.xlane.xlu0 %1296 }
 0x4cc   :  { %1754 = vrcp.f32 %v1297_v47 }
 0x4cd   :  { %1756 = vrcp.f32 %v745_v56 }
 0x4d6   :  { %v2451_v3 = vpop.eup %1754 }
 0x4d7   :  { %v1303_v6 = vrot.slane %v2451_v3, %v2048_v37  ;;  %v1307_v59 = vrot.slane %v2451_v3, %v2263_v5  ;;  %v1311_v61 = vrot.slane %v2451_v3, %v2272_v13  ;;  %v1315_v42 = vrot.slane %v2451_v3, %v2279_v33  ;;  %v1757_v7 = vpop.eup %1756 }
 0x4d8   :  { %v755_v4 = vrot.slane %v1757_v7, %v2263_v5 }
 0x4d9   :  { %v1330_v35 = vmul.f32 %v2300_v58, %v1303_v6  ;;  %v1331_v21 = vmul.f32 %v2302_v62, %v1303_v6  ;;  %v1332_v46 = vmul.f32 %v2312_v1, %v1307_v59  ;;  %v1333_v50 = vmul.f32 %v2314_v15, %v1307_v59 }
 0x4da   :  { %v1334_v0 = vmul.f32 %v2326_v10, %v1311_v61  ;;  %v1335_v30 = vmul.f32 %v2328_v11, %v1311_v61  ;;  %v1336_v58 = vmul.f32 %v2337_v28, %v1315_v42  ;;  %v751_v62 = vrot.slane %v1757_v7, %v2048_v37 }
 0x4db   :  { %v1342_v36 = vpack.c.bf16 %v1331_v21, %v1330_v35  ;;  %v1343_v9 = vpack.c.bf16 %v1333_v50, %v1332_v46  ;;  %v1337_v10 = vmul.f32 %v2339_v31, %v1315_v42  ;;  %v780_v37 = vmul.f32 %v2353_v29, %v755_v4 }
 0x4dc   :  { %v1344_v38 = vpack.c.bf16 %v1335_v30, %v1334_v0  ;;  %v778_v60 = vmul.f32 %v2348_v16, %v751_v62  ;;  %v779_v55 = vmul.f32 %v2346_v44, %v751_v62  ;;  %v759_v28 = vrot.slane %v1757_v7, %v2272_v13 }
 0x4dd   :  { %v1355_v19 = vunpack.c.h.b16 %v1342_v36  ;;  %v1354_v27 = vunpack.c.l.b16 %v1342_v36  ;;  %v1357_v1 = vunpack.c.h.b16 %v1343_v9  ;;  %v1356_v15 = vunpack.c.l.b16 %v1343_v9 }
 0x4de   :  { %v1359_v39 = vunpack.c.h.b16 %v1344_v38  ;;  %v1358_v24 = vunpack.c.l.b16 %v1344_v38  ;;  %v1345_v11 = vpack.c.bf16 %v1337_v10, %v1336_v58  ;;  %v790_v31 = vpack.c.bf16 %v779_v55, %v778_v60 }
 0x4df   :  { %1370 = vperm.xlu0 %1657, %v1355_v19   ;;  %1367 = vperm.xlu1 %1656, %v1354_v27   ;;  %v781_v23 = vmul.f32 %v2360_v32, %v755_v4  ;;  %v782_v5 = vmul.f32 %v2368_v54, %v759_v28  ;;  %v763_v16 = vrot.slane %v1757_v7, %v2279_v33 }
 0x4e0   :  { %v1361_v41 = vunpack.c.h.b16 %v1345_v11  ;;  %v1360_v57 = vunpack.c.l.b16 %v1345_v11  ;;  %v802_v45 = vunpack.c.l.b16 %v790_v31  ;;  %v803_v22 = vunpack.c.h.b16 %v790_v31 }
 0x4e1   :  { %v791_v44 = vpack.c.bf16 %v781_v23, %v780_v37  ;;  %v783_v40 = vmul.f32 %v2376_v51, %v759_v28  ;;  %v784_v13 = vmul.f32 %v2384_v63, %v763_v16  ;;  %v767_v29 = vrot.slane %v1757_v7, %v2288_v48 }
 0x4e2   :  { %v785_v6 = vmul.f32 %v2388_v25, %v763_v16  ;;  %v771_v54 = vrot.slane %v1757_v7, %v2292_v53  ;;  %v1319_v36 = vrot.slane %v2451_v3, %v2288_v48  ;;  %v1323_v0 = vrot.slane %v2451_v3, %v2292_v53 }
 0x4e3   :  { %1376 = vperm.xlu0 %1657, %v1357_v1   ;;  %1373 = vperm.xlu1 %1656, %v1356_v15   ;;  %v805_v47 = vunpack.c.h.b16 %v791_v44  ;;  %v804_v56 = vunpack.c.l.b16 %v791_v44  ;;  %v792_v32 = vpack.c.bf16 %v783_v40, %v782_v5  ;;  %v786_v33 = vmul.f32 %v2391_v18, %v767_v29 }
 0x4e4   :  { %v793_v51 = vpack.c.bf16 %v785_v6, %v784_v13  ;;  %v787_v35 = vmul.f32 %v2355_v43, %v767_v29  ;;  %v788_v63 = vmul.f32 %v2394_v8, %v771_v54  ;;  %v789_v21 = vmul.f32 %v2362_v49, %v771_v54 }
 0x4e5   :  { %v807_v59 = vunpack.c.h.b16 %v792_v32  ;;  %v806_v61 = vunpack.c.l.b16 %v792_v32  ;;  %v1338_v7 = vmul.f32 %v2397_v2, %v1319_v36  ;;  %v1339_v8 = vmul.f32 %v2370_v26, %v1319_v36 }
 0x4e6   :  { %v809_v46 = vunpack.c.h.b16 %v793_v51  ;;  %v808_v50 = vunpack.c.l.b16 %v793_v51  ;;  %v794_v25 = vpack.c.bf16 %v787_v35, %v786_v33  ;;  %v795_v18 = vpack.c.bf16 %v789_v21, %v788_v63 }
 0x4e7   :  { %1382 = vperm.xlu0 %1657, %v1359_v39   ;;  %1379 = vperm.xlu1 %1656, %v1358_v24   ;;  %v1346_v27 = vpack.c.bf16 %v1339_v8, %v1338_v7  ;;  %v1340_v9 = vmul.f32 %v2400_v52, %v1323_v0  ;;  %v1341_v48 = vmul.f32 %v2378_v34, %v1323_v0 }
 0x4e8   :  { %v811_v42 = vunpack.c.h.b16 %v794_v25  ;;  %v810_v43 = vunpack.c.l.b16 %v794_v25  ;;  %v813_v49 = vunpack.c.h.b16 %v795_v18  ;;  %v812_v19 = vunpack.c.l.b16 %v795_v18 }
 0x4e9   :  { %v1363_v30 = vunpack.c.h.b16 %v1346_v27  ;;  %v1362_v58 = vunpack.c.l.b16 %v1346_v27  ;;  %v1347_v53 = vpack.c.bf16 %v1341_v48, %v1340_v9 }
 0x4eb   :  { %1388 = vperm.xlu0 %1657, %v1361_v41   ;;  %1385 = vperm.xlu1 %1656, %v1360_v57   ;;  %v1365_v3 = vunpack.c.h.b16 %v1347_v53  ;;  %v1364_v2 = vunpack.c.l.b16 %v1347_v53 }
 0x4ef   :  { %815 = vperm.xlu0 %1657, %v802_v45   ;;  %818 = vperm.xlu1 %1656, %v803_v22  }
 0x4f3   :  { %824 = vperm.xlu0 %1657, %v805_v47   ;;  %821 = vperm.xlu1 %1656, %v804_v56  }
 0x4f7   :  { %830 = vperm.xlu0 %1657, %v807_v59   ;;  %827 = vperm.xlu1 %1656, %v806_v61  }
 0x4fb   :  { %836 = vperm.xlu0 %1657, %v809_v46   ;;  %833 = vperm.xlu1 %1656, %v808_v50  }
 0x4ff   :  { %842 = vperm.xlu0 %1657, %v811_v42   ;;  %839 = vperm.xlu1 %1656, %v810_v43  }
 0x503   :  { %848 = vperm.xlu0 %1657, %v813_v49   ;;  %845 = vperm.xlu1 %1656, %v812_v19  }
 0x507   :  { %1394 = vperm.xlu0 %1657, %v1363_v30   ;;  %1391 = vperm.xlu1 %1656, %v1362_v58  }
 0x50b   :  { %1400 = vperm.xlu0 %1657, %v1365_v3   ;;  %1397 = vperm.xlu1 %1656, %v1364_v2  }
 0x55e   :  { %v1371_v26 = vpop.permute.xlu0 %1370  ;;  %v1368_v62 = vpop.permute.xlu1 %1367 }
 0x55f   :  { %v1409_v33 = vrot.slane %v1371_v26, %v2117_v20  ;;  %v1405_v25 = vrot.slane %v1368_v62, %v2111_v17 }
 0x561   :  { %v1410_v3 = vsel %vm506_vm2, %v1409_v33, %v1405_v25 }
 0x562   :  { %v1377_v1 = vpop.permute.xlu0 %1376  ;;  %v1374_v15 = vpop.permute.xlu1 %1373 }
 0x563   :  { %v1418_v54 = vrot.slane %v1377_v1, %v2117_v20  ;;  %v1414_v63 = vrot.slane %v1374_v15, %v2111_v17 }
 0x565   :  { %v1419_v9 = vsel %vm506_vm2, %v1418_v54, %v1414_v63 }
 0x566   :  { %v1383_v38 = vpop.permute.xlu0 %1382  ;;  %v1380_v10 = vpop.permute.xlu1 %1379  ;;  %v1456_v26 = vsel %vm553_vm3, %v1419_v9, %v1410_v3  ;;  %v1526_v3 = vstv %s2581_s8 }
 0x567   :  { %v1427_v36 = vrot.slane %v1383_v38, %v2117_v20  ;;  %v1423_v18 = vrot.slane %v1380_v10, %v2111_v17  ;;  %v2586_v38 = vmov 0.0  }
 0x569   :  { %v1428_v53 = vsel %vm506_vm2, %v1427_v36, %v1423_v18 }
 0x56a   :  { %v1389_v52 = vpop.permute.xlu0 %1388  ;;  %v1386_v60 = vpop.permute.xlu1 %1385  ;;  %v1457_v10 = vsel %vm555_vm4, %v1428_v53, %v1456_v26 }
 0x56b   :  { %v1436_v42 = vrot.slane %v1389_v52, %v2117_v20  ;;  %v1432_v43 = vrot.slane %v1386_v60, %v2111_v17 }
 0x56d   :  { %v1437_v2 = vsel %vm506_vm2, %v1436_v42, %v1432_v43 }
 0x56e   :  { %v816_v34 = vpop.permute.xlu0 %815  ;;  %v819_v4 = vpop.permute.xlu1 %818 }
 0x56f   :  { %v853_v5 = vrot.slane %v816_v34, %v2111_v17  ;;  %v857_v16 = vrot.slane %v819_v4, %v2117_v20  ;;  %v1458_v34 = vsel %vm557_vm5, %v1437_v2, %v1457_v10 }
 0x571   :  { %v858_v32 = vsel %vm506_vm2, %v857_v16, %v853_v5 }
 0x572   :  { %v825_v39 = vpop.permute.xlu0 %824  ;;  %v822_v24 = vpop.permute.xlu1 %821 }
 0x573   :  { %v866_v41 = vrot.slane %v825_v39, %v2117_v20  ;;  %v862_v57 = vrot.slane %v822_v24, %v2111_v17 }
 0x575   :  { %v867_v13 = vsel %vm506_vm2, %v866_v41, %v862_v57 }
 0x576   :  { %v831_v11 = vpop.permute.xlu0 %830  ;;  %v828_v55 = vpop.permute.xlu1 %827  ;;  %v904_v59 = vsel %vm553_vm3, %v867_v13, %v858_v32 }
 0x577   :  { %v875_v31 = vrot.slane %v831_v11, %v2117_v20  ;;  %v871_v23 = vrot.slane %v828_v55, %v2111_v17  ;;  %v1764_v11 = vld [vmem:[%s2576_s3] sm:$0x3f] }
 0x578   :  { %v316_v55 = vmul.f32 %v1764_v11, %v1764_v11 }
 0x579   :  { %v876_v56 = vsel %vm506_vm2, %v875_v31, %v871_v23 }
 0x57a   :  { %v837_v37 = vpop.permute.xlu0 %836  ;;  %v834_v28 = vpop.permute.xlu1 %833  ;;  %v905_v21 = vsel %vm555_vm4, %v876_v56, %v904_v59 }
 0x57b   :  { %v884_v45 = vrot.slane %v837_v37, %v2117_v20  ;;  %v880_v22 = vrot.slane %v834_v28, %v2111_v17 }
 0x57d   :  { %v885_v6 = vsel %vm506_vm2, %v884_v45, %v880_v22 }
 0x57e   :  { %v843_v44 = vpop.permute.xlu0 %842  ;;  %v840_v40 = vpop.permute.xlu1 %839  ;;  %v906_v0 = vsel %vm557_vm5, %v885_v6, %v905_v21 }
 0x57f   :  { %v893_v29 = vrot.slane %v843_v44, %v2117_v20  ;;  %v889_v47 = vrot.slane %v840_v40, %v2111_v17 }
 0x581   :  { %v894_v61 = vsel %vm506_vm2, %v893_v29, %v889_v47 }
 0x582   :  { %v849_v51 = vpop.permute.xlu0 %848  ;;  %v846_v35 = vpop.permute.xlu1 %845  ;;  %v907_v7 = vsel %vm559_vm6, %v894_v61, %v906_v0 }
 0x583   :  { %v902_v46 = vrot.slane %v849_v51, %v2117_v20  ;;  %v898_v50 = vrot.slane %v846_v35, %v2111_v17 }
 0x585   :  { %v903_v8 = vsel %vm506_vm2, %v902_v46, %v898_v50  ;;  %v2587_v46 = vld [vmem:[#allocation17_spill] sm:$0xff] }
 0x586   :  { %v908_v49 = vsel %vm561_vm7, %v903_v8, %v907_v7  ;;  %v1395_v19 = vpop.permute.xlu0 %1394  ;;  %v1392_v27 = vpop.permute.xlu1 %1391  ;;  %vm327_vm11 = vcmp.eq.s32.totalorder %v2587_v46, %v2101_v12 }
 0x587   :  { %v909_v48 = vpack.c.b16 %v908_v49, %v908_v49  ;;  %v1445_v30 = vrot.slane %v1395_v19, %v2117_v20  ;;  %v1441_v58 = vrot.slane %v1392_v27, %v2111_v17 }
 0x589   :  { %1636 = vmatmul.mubr.msk.bf16.vlgmr.msra.gmra.mrb[4].mxu1 %vm910_vm9, %v909_v48  ;;  %v1446_v62 = vsel %vm506_vm2, %v1445_v30, %v1441_v58 }
 0x58a   :  { %1640 = vmatpush3.bf16.msra.mxu1 %v2037_v14  ;;  %v1401_v1 = vpop.permute.xlu0 %1400  ;;  %v1398_v15 = vpop.permute.xlu1 %1397  ;;  %1641 = vmatprep.mubr.msk.bf16.mxu1 %vm1890_vm1, %v2586_v38  ;;  %v1459_v4 = vsel %vm559_vm6, %v1446_v62, %v1458_v34 }
 0x58b   :  { %v1454_v52 = vrot.slane %v1401_v1, %v2117_v20  ;;  %v1450_v60 = vrot.slane %v1398_v15, %v2111_v17  ;;  %v318_v20 = vsel %vm317_vm10, %v316_v55, 0.0 }
 0x58c   :  { %319 = vadd.xlane.f32.xlu1 %v318_v20 }
 0x58d   :  { %v1455_v39 = vsel %vm506_vm2, %v1454_v52, %v1450_v60 }
 0x58e   :  { %v1460_v24 = vsel %vm561_vm7, %v1455_v39, %v1459_v4 }
 0x58f   :  { %v1461_v14 = vpack.c.b16 %v1460_v24, %v1460_v24 }
 0x591   :  { %1642 = vmatmul.mubr.msk.bf16.vlgmr.msra.gmra.mrb[8].mxu1 %vm910_vm9, %v1461_v14 }
 0x619   :  { %v320_v29 = vpop.xlane.xlu1 %319 }
 0x61a   :  { %1758 = vrsqrt.f32 %v320_v29 }
 0x624   :  { %v1759_v56 = vpop.eup %1758 }
 0x625   :  { %v322_v6 = vmul.f32 %v1764_v11, %v1759_v56 }
 0x65c   :  { %v948_v17 = vpop.f32.mrb[4].mxu1 }
 0x65d   :  { %v954_v37 = vmax.f32 %v948_v17, 0.0  ;;  %v1637_v28 = vpop.f32.mrb[5].mxu1 }
 0x65e   :  { %v951_v41 = vpop.f32.mrb[6].mxu1 }
 0x65f   :  { %v1638_v57 = vpop.f32.mrb[7].mxu1  ;;  %v955_v31 = vmul.f32 %v954_v37, %v954_v37 }
 0x661   :  { %v956_v23 = vsel %vm317_vm10, %v955_v31, 0.0 }
 0x662   :  { %957 = vadd.xlane.f32.xlu0 %v956_v23 }
 0x664   :  { %v1499_v5 = vpop.f32.mrb[8].mxu1 }
 0x665   :  { %v1505_v16 = vmax.f32 %v1499_v5, 0.0  ;;  %v1643_v45 = vpop.f32.mrb[9].mxu1 }
 0x666   :  { %v1502_v22 = vpop.f32.mrb[10].mxu1 }
 0x667   :  { %v1644_v44 = vpop.f32.mrb[11].mxu1  ;;  %v1506_v40 = vmul.f32 %v1505_v16, %v1505_v16 }
 0x669   :  { %v1507_v13 = vsel %vm317_vm10, %v1506_v40, 0.0 }
 0x66a   :  { %1508 = vadd.xlane.f32.xlu0 %v1507_v13 }
 0x6ef   :  { %v958_v47 = vpop.xlane.xlu0 %957 }
 0x6f0   :  { %1760 = vrsqrt.f32 %v958_v47 }
 0x6f7   :  { %v1509_v32 = vpop.xlane.xlu0 %1508 }
 0x6f8   :  { %1762 = vrsqrt.f32 %v1509_v32 }
 0x6fa   :  { %v1761_v33 = vpop.eup %1760 }
 0x6fb   :  { %v960_v54 = vmul.f32 %v1761_v33, %v954_v37 }
 0x6fd   :  { %v961_v59 = vmul.f32 %v960_v54, %v322_v6 }
 0x6ff   :  { %v962_v61 = vsel %vm317_vm10, %v961_v59, 0.0 }
 0x700   :  { %963 = vadd.xlane.f32.xlu1 %v962_v61 }
 0x702   :  { %v1763_v51 = vpop.eup %1762 }
 0x703   :  { %v1511_v35 = vmul.f32 %v1763_v51, %v1505_v16 }
 0x705   :  { %v1512_v63 = vmul.f32 %v1511_v35, %v322_v6 }
 0x707   :  { %v1513_v21 = vsel %vm317_vm10, %v1512_v63, 0.0 }
 0x708   :  { %1514 = vadd.xlane.f32.xlu0 %v1513_v21 }
 0x78d   :  { %v964_v50 = vpop.xlane.xlu1 %963 }
 0x78e   :  { %v965_v25 = vsel %vm327_vm11, %v964_v50, 0.0 }
 0x78f   :  { %v966_v36 = vsel %vm317_vm10, %v965_v25, 0.0 }
 0x790   :  { %v967_v18 = vrot.slane %v966_v36, 4 }
 0x792   :  { %v968_v0 = vadd.f32 %v967_v18, %v966_v36 }
 0x794   :  { %v969_v43 = vrot.slane %v968_v0, 2 }
 0x795   :  { %v1515_v42 = vpop.xlane.xlu0 %1514 }
 0x796   :  { %v1516_v7 = vsel %vm327_vm11, %v1515_v42, 0.0  ;;  %v970_v19 = vadd.f32 %v969_v43, %v968_v0 }
 0x797   :  { %v1517_v8 = vsel %vm317_vm10, %v1516_v7, 0.0 }
 0x798   :  { %v1518_v49 = vrot.slane %v1517_v8, 4  ;;  %v971_v48 = vrot.slane %v970_v19, 1 }
 0x79a   :  { %v1519_v27 = vadd.f32 %v1518_v49, %v1517_v8  ;;  %v972_v12 = vadd.f32 %v971_v48, %v970_v19 }
 0x79c   :  { %v1520_v9 = vrot.slane %v1519_v27, 2 }
 0x79e   :  { %v1521_v30 = vadd.f32 %v1520_v9, %v1519_v27 }
 0x7a0   :  { %v1522_v58 = vrot.slane %v1521_v30, 1 }
 0x7a2   :  { %v1523_v53 = vadd.f32 %v1522_v58, %v1521_v30 }
 0x7a4   :  { %v1525_v2 = vsel %vm1524_vm12, %v972_v12, %v1523_v53 }
 0x7a5   :  { %v1527_v26 = vmul.f32 %v1526_v3, %v1525_v2 }
 0x7a7   :  { %1528 = vst [vmem:[#allocation12] sm:$0x3] %v1527_v26 }
 0x7a8   :  { %1864 = shalt.err (!%p1861_p8)
}
 0x7a9   :  { %s1865_s12 = scalar_lea.hbm %s2582_s9, 32 }
 0x7aa   :  { %p1866_p9 = scmp.ne.s32.totalorder %s2582_s9, %s1865_s12  ;;  %p1869_p10 = scmp.lt.u32.totalorder %s1865_s12, %s2582_s9 }
 0x7ac   :  { %p1871_p11 = pnand %p1869_p10, %p1866_p9 }
 0x7ae   :  { %1874 = shalt.err (!%p1871_p11)
}
 0x7af   :  { %1538 = dma.vmem_to_hbm [thread:$0]  %s1536_s24, 32, %s2582_s9, [#allocation6]  }
 0x7b0   :  { %1881 = dma.done.wait [#allocation6], 32  }
 0x7b1   :  { %1882 = vsyncadd [#allocation6], 4294967264 }
 0x7b2   :  { %1542 = vsyncpa [#allocation5], 1 }
 0x7b3   :  { %1543 = vsyncpa [#allocation8], 1 }
 0x7b4   :  { %1544 = vsyncpa [#allocation11], 1 }
 0x7b5   :  { %1545 = vsyncpa [#allocation6], 1 }

</bundles_post_ra>
